<compile_context>
chip_gen: v7x
topology: tpu7x:2x2x1
jax: 0.10.0
libtpu: 0.0.40
codegen_flags: <defaults>
</compile_context>

<pallas_src>
import jax
import jax.numpy as jnp
from jax.experimental import pallas as pl
from jax.experimental.pallas import tpu as pltpu


# ----------------------------------------------------------------------------
# Pallas kernels
# ----------------------------------------------------------------------------
def _conv_relu_pool_math(cols_ref, w_ref, b_ref):
    """Fused conv-as-GEMM + bias + ReLU + 2x2 max-pool for one batch element.

    cols_ref : (4, K, OH*OW) im2col patches grouped by 2x2-window element
               (dy, dx); K-order is (ky, kx, cin).
    w_ref    : (Cout, K)     transposed conv weight (K-order matches cols).
    b_ref    : (Cout, 1)     bias.
    returns  : (Cout, OH*OW) pooled activations in f32.

    Max-pool commutes with the monotonic bias-add + ReLU, so we take a running
    max over the 4 window-element GEMM results and apply bias/ReLU once.
    """
    w = w_ref[...]
    m = jnp.dot(w, cols_ref[0], preferred_element_type=jnp.float32)
    for i in range(1, 4):
        m = jnp.maximum(
            m, jnp.dot(w, cols_ref[i], preferred_element_type=jnp.float32))
    return jnp.maximum(m + b_ref[...], 0.0)


def _conv_stage_kernel(cols_ref, w_ref, b_ref, o_ref):
    o_ref[...] = _conv_relu_pool_math(cols_ref, w_ref, b_ref).astype(o_ref.dtype)


def _conv_stage_head_kernel(cols_ref, w_ref, b_ref, w3_ref, b3_ref,
                            feat_ref, out_ref):
    """Second stage: conv + ReLU + pool, plus the Linear(Cout*OH*OW -> 1) head
    fused as a VPU multiply + reduction on the VMEM-resident features."""
    pooled = _conv_relu_pool_math(cols_ref, w_ref, b_ref)        # (Cout, OHW)
    feat_ref[...] = pooled.astype(feat_ref.dtype)
    t = jnp.sum(pooled * w3_ref[...], axis=1, keepdims=True)     # (Cout, 1)
    t = jnp.sum(t, axis=0, keepdims=True)                        # (1, 1)
    out_ref[...] = (t + b3_ref[...]).astype(out_ref.dtype)


# ----------------------------------------------------------------------------
# Glue: pool-grouped im2col (XLA) + pallas_call wrappers
# ----------------------------------------------------------------------------
def _im2col_pool_grouped(xp, k):
    """xp: (B, Hp, Wp, C) zero-padded NHWC input -> (B, 4, k*k*C, OH*OW).

    The M axis is the *pooled* spatial grid (oh, ow); the leading size-4 axis
    enumerates the (dy, dx) element of each 2x2 pooling window, so the kernel
    can fuse max-pool as an elementwise max over that axis.  K-order is
    (ky, kx, cin), matching an OIHW weight transposed to (Cout, kH, kW, Cin)
    and flattened.
    """
    B, Hp, Wp, C = xp.shape
    HO, WO = Hp - k + 1, Wp - k + 1          # conv output (pre-pool)
    assert HO % 2 == 0 and WO % 2 == 0
    OH, OW = HO // 2, WO // 2                # pooled output
    taps = [xp[:, ky:ky + HO, kx:kx + WO, :]
            for ky in range(k) for kx in range(k)]
    p = jnp.stack(taps, axis=3)                      # (B, HO, WO, kk, C)
    p = p.reshape(B, OH, 2, OW, 2, k * k, C)         # (B, oh, dy, ow, dx, kk, C)
    p = p.transpose(0, 2, 4, 5, 6, 1, 3)             # (B, dy, dx, kk, C, oh, ow)
    # TODO(synk): build these patches inside the Pallas kernel from the
    # (VMEM-resident, <64 KiB) padded input to remove this XLA glue entirely.
    return p.reshape(B, 4, k * k * C, OH * OW), (OH, OW)


def conv_relu_pool(x_nhwc, w_oihw, bias, *, k=7, pad=2, head=None,
                   compute_dtype=jnp.float32):
    """One fused Conv2d(k, stride=1, padding=pad) + ReLU + MaxPool2d(2) stage.

    x_nhwc: (B, H, W, Cin); w_oihw: (Cout, Cin, k, k) (PyTorch layout).
    If head=(w_lin, b_lin) (a PyTorch Linear with out_features == 1 over the
    channel-major flatten of the pooled output), the head is fused into the
    same kernel and (pooled_features, linear_out) are both returned.
    Pooled activations come back as (B, Cout, OH*OW) (NCHW, space flattened).
    """
    B = x_nhwc.shape[0]
    Cout, Cin = w_oihw.shape[0], w_oihw.shape[1]
    xp = jnp.pad(x_nhwc, ((0, 0), (pad, pad), (pad, pad), (0, 0)))
    cols, (OH, OW) = _im2col_pool_grouped(xp, k)                  # (B,4,K,OHW)
    K, OHW = k * k * Cin, OH * OW

    # Transposed GEMM operands: big spatial axis on lanes, Cout on sublanes.
    wT = jnp.transpose(w_oihw, (0, 2, 3, 1)).reshape(Cout, K)     # K=(ky,kx,c)
    cols = cols.astype(compute_dtype)
    wT = wT.astype(compute_dtype)
    b2 = bias.reshape(Cout, 1).astype(jnp.float32)

    # One grid step per batch element, whole-M blocks (no M padding/slicing);
    # "parallel" lets v7x shard the batch elements across its 2 TensorCores.
    cols_spec = pl.BlockSpec((None, 4, K, OHW), lambda b: (b, 0, 0, 0))
    w_spec = pl.BlockSpec((Cout, K), lambda b: (0, 0))
    b_spec = pl.BlockSpec((Cout, 1), lambda b: (0, 0))
    feat_spec = pl.BlockSpec((None, Cout, OHW), lambda b: (b, 0, 0))
    cparams = pltpu.CompilerParams(dimension_semantics=("parallel",))

    if head is None:
        out = pl.pallas_call(
            _conv_stage_kernel,
            out_shape=jax.ShapeDtypeStruct((B, Cout, OHW), jnp.float32),
            grid=(B,),
            in_specs=[cols_spec, w_spec, b_spec],
            out_specs=feat_spec,
            compiler_params=cparams,
        )(cols, wT, b2)
        return out, (OH, OW)

    w_lin, b_lin = head
    assert w_lin.shape == (1, Cout * OHW), "fused head expects Linear(Cout*OH*OW, 1)"
    w3 = w_lin.reshape(Cout, OHW).astype(jnp.float32)  # channel-major == torch .view order
    b3 = jnp.asarray(b_lin, jnp.float32).reshape(1, 1)
    feat, out = pl.pallas_call(
        _conv_stage_head_kernel,
        out_shape=(jax.ShapeDtypeStruct((B, Cout, OHW), jnp.float32),
                   jax.ShapeDtypeStruct((B, 1, 1), jnp.float32)),
        grid=(B,),
        in_specs=[cols_spec, w_spec, b_spec,
                  pl.BlockSpec((Cout, OHW), lambda b: (0, 0)),
                  pl.BlockSpec((1, 1), lambda b: (0, 0))],
        out_specs=(feat_spec, pl.BlockSpec((None, 1, 1), lambda b: (b, 0, 0))),
        compiler_params=cparams,
    )(cols, wT, b2, w3, b3)
    return (feat, out), (OH, OW)


def cnn2_forward(x_nchw, params, *, compute_dtype=jnp.float32):
    """Replicates CNN2.forward(x): returns (output (B, 1), features (B, 16*8*8)).

    Weights use PyTorch layouts: conv (Cout, Cin, kH, kW), linear (out, in)."""
    B = x_nchw.shape[0]
    x = jnp.transpose(x_nchw, (0, 2, 3, 1))                       # NCHW -> NHWC
    # Stage 1: Conv(3->16, k7, p2) + ReLU + MaxPool2 -> (B, 16, 18*18)
    y1, (oh1, ow1) = conv_relu_pool(x, params["w1"], params["b1"],
                                    compute_dtype=compute_dtype)
    c1 = params["w1"].shape[0]
    x2 = y1.reshape(B, c1, oh1, ow1).transpose(0, 2, 3, 1)        # (B, 18, 18, 16)
    # Stage 2 + fused Linear head -> feat (B, 16, 8*8), out (B, 1, 1)
    (feat_ncs, out_b11), _ = conv_relu_pool(
        x2, params["w2"], params["b2"],
        head=(params["w3"], params["b3"]), compute_dtype=compute_dtype)
    feat = feat_ncs.reshape(B, -1)   # channel-major flatten == torch x.view(B, -1)
    out = out_b11.reshape(B, 1)
    return out, feat


# ----------------------------------------------------------------------------
# Pure-JAX reference (mirrors the PyTorch module) and parameter init
# ----------------------------------------------------------------------------
def cnn2_reference(x_nchw, params):
    def conv_relu(x, w, b):
        y = jax.lax.conv_general_dilated(
            x, w, window_strides=(1, 1), padding=((2, 2), (2, 2)),
            dimension_numbers=("NCHW", "OIHW", "NCHW"))
        return jnp.maximum(y + b[None, :, None, None], 0.0)

    def maxpool2(x):
        b, c, h, w = x.shape
        return x.reshape(b, c, h // 2, 2, w // 2, 2).max(axis=(3, 5))

    x = maxpool2(conv_relu(x_nchw, params["w1"], params["b1"]))
    x = maxpool2(conv_relu(x, params["w2"], params["b2"]))
    feat = x.reshape(x.shape[0], -1)
    out = feat @ params["w3"].T + params["b3"]
    return out, feat


def init_params(key):
    k1, k2, k3, k4, k5, k6 = jax.random.split(key, 6)
    c1 = c2 = 16
    return {
        # PyTorch layouts: conv OIHW, linear (out_features, in_features).
        "w1": jax.random.normal(k1, (c1, 3, 7, 7), jnp.float32) * (7 * 7 * 3) ** -0.5,
        "b1": jax.random.normal(k2, (c1,), jnp.float32) * 0.1,
        "w2": jax.random.normal(k3, (c2, c1, 7, 7), jnp.float32) * (7 * 7 * c1) ** -0.5,
        "b2": jax.random.normal(k4, (c2,), jnp.float32) * 0.1,
        "w3": jax.random.normal(k5, (1, c2 * 8 * 8), jnp.float32) * (c2 * 8 * 8) ** -0.5,
        "b3": jax.random.normal(k6, (1,), jnp.float32) * 0.1,
    }


if __name__ == "__main__":
    key = jax.random.PRNGKey(0)
    key_x, key_p = jax.random.split(key)
    # Spatial size 38 is what the forward implies: two (conv k7 p2 -> -2, then
    # pool /2) stages ending at 8x8 before Linear(16*8*8, 1).
    x = jax.random.normal(key_x, (2, 3, 38, 38), jnp.float32)
    params = init_params(key_p)

    fwd = jax.jit(cnn2_forward)
    out, feat = jax.block_until_ready(fwd(x, params))
    assert out.shape == (2, 1) and feat.shape == (2, 16 * 8 * 8)
    assert out.dtype == jnp.float32 and feat.dtype == jnp.float32

    # Numerical check against a pure-JAX/XLA replica of the PyTorch module.
    ref_out, ref_feat = jax.block_until_ready(jax.jit(cnn2_reference)(x, params))
    assert jnp.allclose(feat, ref_feat, rtol=1e-2, atol=5e-2), \
        float(jnp.max(jnp.abs(feat - ref_feat)))
    assert jnp.allclose(out, ref_out, rtol=1e-2, atol=5e-2), \
        float(jnp.max(jnp.abs(out - ref_out)))
    print("KERNEL_OK")
</pallas_src>

<mosaic_0001>
module attributes {stable_mosaic.version = 11 : i64} {
  func.func @_conv_stage_kernel(%arg0: i32, %arg1: memref<1x4x147x324xf32, #tpu.memory_space<vmem>>, %arg2: memref<16x147xf32, #tpu.memory_space<vmem>>, %arg3: memref<16x1xf32, #tpu.memory_space<vmem>>, %arg4: memref<1x16x324xf32, #tpu.memory_space<vmem>>) attributes {dimension_semantics = [#tpu.dimension_semantics<parallel>], iteration_bounds = array<i64: 2>, scalar_prefetch = 0 : i64, scratch_operands = 0 : i64, tpu.core_type = #tpu.core_type<tc>, window_params = [{transform_indices = @transform_0, window_bounds = array<i64: 1, 4, 147, 324>}, {pipeline_mode = #tpu.pipeline_mode<synchronous>, transform_indices = @transform_1, window_bounds = array<i64: 16, 147>}, {pipeline_mode = #tpu.pipeline_mode<synchronous>, transform_indices = @transform_2, window_bounds = array<i64: 16, 1>}, {transform_indices = @transform_3, window_bounds = array<i64: 1, 16, 324>}]} {
    %c0 = arith.constant 0 : index
    %c0_0 = arith.constant 0 : index
    %0 = vector.load %arg2[%c0, %c0_0] : memref<16x147xf32, #tpu.memory_space<vmem>>, vector<16x147xf32>
    %c0_1 = arith.constant 0 : index
    %c0_2 = arith.constant 0 : index
    %c0_3 = arith.constant 0 : index
    %c0_4 = arith.constant 0 : index
    %1 = vector.load %arg1[%c0_1, %c0_2, %c0_3, %c0_4] : memref<1x4x147x324xf32, #tpu.memory_space<vmem>>, vector<1x1x147x324xf32>
    %2 = vector.shape_cast %1 : vector<1x1x147x324xf32> to vector<147x324xf32>
    %cst = arith.constant dense<0.000000e+00> : vector<16x324xf32>
    %3 = tpu.matmul %0, %2, %cst {dimension_numbers = #tpu.dot_dimension_numbers<[1], [0], [0], [1], [0, 0, 1, 1], [], []>} : vector<16x147xf32>, vector<147x324xf32>, vector<16x324xf32> -> vector<16x324xf32>
    %c0_5 = arith.constant 0 : index
    %c1 = arith.constant 1 : index
    %c0_6 = arith.constant 0 : index
    %c0_7 = arith.constant 0 : index
    %4 = vector.load %arg1[%c0_5, %c1, %c0_6, %c0_7] : memref<1x4x147x324xf32, #tpu.memory_space<vmem>>, vector<1x1x147x324xf32>
    %5 = vector.shape_cast %4 : vector<1x1x147x324xf32> to vector<147x324xf32>
    %cst_8 = arith.constant dense<0.000000e+00> : vector<16x324xf32>
    %6 = tpu.matmul %0, %5, %cst_8 {dimension_numbers = #tpu.dot_dimension_numbers<[1], [0], [0], [1], [0, 0, 1, 1], [], []>} : vector<16x147xf32>, vector<147x324xf32>, vector<16x324xf32> -> vector<16x324xf32>
    %7 = arith.maximumf %3, %6 : vector<16x324xf32>
    %c0_9 = arith.constant 0 : index
    %c2 = arith.constant 2 : index
    %c0_10 = arith.constant 0 : index
    %c0_11 = arith.constant 0 : index
    %8 = vector.load %arg1[%c0_9, %c2, %c0_10, %c0_11] : memref<1x4x147x324xf32, #tpu.memory_space<vmem>>, vector<1x1x147x324xf32>
    %9 = vector.shape_cast %8 : vector<1x1x147x324xf32> to vector<147x324xf32>
    %cst_12 = arith.constant dense<0.000000e+00> : vector<16x324xf32>
    %10 = tpu.matmul %0, %9, %cst_12 {dimension_numbers = #tpu.dot_dimension_numbers<[1], [0], [0], [1], [0, 0, 1, 1], [], []>} : vector<16x147xf32>, vector<147x324xf32>, vector<16x324xf32> -> vector<16x324xf32>
    %11 = arith.maximumf %7, %10 : vector<16x324xf32>
    %c0_13 = arith.constant 0 : index
    %c3 = arith.constant 3 : index
    %c0_14 = arith.constant 0 : index
    %c0_15 = arith.constant 0 : index
    %12 = vector.load %arg1[%c0_13, %c3, %c0_14, %c0_15] : memref<1x4x147x324xf32, #tpu.memory_space<vmem>>, vector<1x1x147x324xf32>
    %13 = vector.shape_cast %12 : vector<1x1x147x324xf32> to vector<147x324xf32>
    %cst_16 = arith.constant dense<0.000000e+00> : vector<16x324xf32>
    %14 = tpu.matmul %0, %13, %cst_16 {dimension_numbers = #tpu.dot_dimension_numbers<[1], [0], [0], [1], [0, 0, 1, 1], [], []>} : vector<16x147xf32>, vector<147x324xf32>, vector<16x324xf32> -> vector<16x324xf32>
    %15 = arith.maximumf %11, %14 : vector<16x324xf32>
    %c0_17 = arith.constant 0 : index
    %c0_18 = arith.constant 0 : index
    %16 = vector.load %arg3[%c0_17, %c0_18] : memref<16x1xf32, #tpu.memory_space<vmem>>, vector<16x1xf32>
    %17 = vector.broadcast %16 : vector<16x1xf32> to vector<16x324xf32>
    %18 = arith.addf %15, %17 : vector<16x324xf32>
    %cst_19 = arith.constant 0.000000e+00 : f32
    %19 = vector.broadcast %cst_19 : f32 to vector<16x324xf32>
    %20 = arith.maximumf %18, %19 : vector<16x324xf32>
    %c0_20 = arith.constant 0 : index
    %c0_21 = arith.constant 0 : index
    %c0_22 = arith.constant 0 : index
    %21 = vector.load %arg4[%c0_20, %c0_21, %c0_22] : memref<1x16x324xf32, #tpu.memory_space<vmem>>, vector<1x16x324xf32>
    %22 = vector.shape_cast %21 : vector<1x16x324xf32> to vector<16x324xf32>
    %23 = vector.shape_cast %20 : vector<16x324xf32> to vector<1x16x324xf32>
    tpu.vector_store %arg4[%c0_20, %c0_21, %c0_22], %23 {strides = array<i32>} : memref<1x16x324xf32, #tpu.memory_space<vmem>>, vector<1x16x324xf32>,
    return
  }
  func.func @transform_0(%arg0: i32) -> (i32, i32, i32, i32) {
    %c0_i32 = arith.constant 0 : i32
    %c0_i32_0 = arith.constant 0 : i32
    %c0_i32_1 = arith.constant 0 : i32
    %c0_i32_2 = arith.constant 0 : i32
    return %arg0, %c0_i32, %c0_i32_0, %c0_i32_1 : i32, i32, i32, i32
  }
  func.func @transform_1(%arg0: i32) -> (i32, i32) {
    %c0_i32 = arith.constant 0 : i32
    %c0_i32_0 = arith.constant 0 : i32
    %c0_i32_1 = arith.constant 0 : i32
    return %c0_i32, %c0_i32_0 : i32, i32
  }
  func.func @transform_2(%arg0: i32) -> (i32, i32) {
    %c0_i32 = arith.constant 0 : i32
    %c0_i32_0 = arith.constant 0 : i32
    %c0_i32_1 = arith.constant 0 : i32
    return %c0_i32, %c0_i32_0 : i32, i32
  }
  func.func @transform_3(%arg0: i32) -> (i32, i32, i32) {
    %c0_i32 = arith.constant 0 : i32
    %c0_i32_0 = arith.constant 0 : i32
    %c0_i32_1 = arith.constant 0 : i32
    return %arg0, %c0_i32, %c0_i32_0 : i32, i32, i32
  }
}

module attributes {stable_mosaic.version = 11 : i64} {
  func.func @_conv_stage_head_kernel(%arg0: i32, %arg1: memref<1x4x784x64xf32, #tpu.memory_space<vmem>>, %arg2: memref<16x784xf32, #tpu.memory_space<vmem>>, %arg3: memref<16x1xf32, #tpu.memory_space<vmem>>, %arg4: memref<16x64xf32, #tpu.memory_space<vmem>>, %arg5: memref<1x1xf32, #tpu.memory_space<vmem>>, %arg6: memref<1x16x64xf32, #tpu.memory_space<vmem>>, %arg7: memref<1x1x1xf32, #tpu.memory_space<vmem>>) attributes {dimension_semantics = [#tpu.dimension_semantics<parallel>], iteration_bounds = array<i64: 2>, scalar_prefetch = 0 : i64, scratch_operands = 0 : i64, tpu.core_type = #tpu.core_type<tc>, window_params = [{transform_indices = @transform_0, window_bounds = array<i64: 1, 4, 784, 64>}, {pipeline_mode = #tpu.pipeline_mode<synchronous>, transform_indices = @transform_1, window_bounds = array<i64: 16, 784>}, {pipeline_mode = #tpu.pipeline_mode<synchronous>, transform_indices = @transform_2, window_bounds = array<i64: 16, 1>}, {pipeline_mode = #tpu.pipeline_mode<synchronous>, transform_indices = @transform_3, window_bounds = array<i64: 16, 64>}, {pipeline_mode = #tpu.pipeline_mode<synchronous>, transform_indices = @transform_4, window_bounds = array<i64: 1, 1>}, {transform_indices = @transform_5, window_bounds = array<i64: 1, 16, 64>}, {transform_indices = @transform_6, window_bounds = array<i64: 1, 1, 1>}]} {
    %c0 = arith.constant 0 : index
    %c0_0 = arith.constant 0 : index
    %0 = vector.load %arg2[%c0, %c0_0] : memref<16x784xf32, #tpu.memory_space<vmem>>, vector<16x784xf32>
    %c0_1 = arith.constant 0 : index
    %c0_2 = arith.constant 0 : index
    %c0_3 = arith.constant 0 : index
    %c0_4 = arith.constant 0 : index
    %1 = vector.load %arg1[%c0_1, %c0_2, %c0_3, %c0_4] : memref<1x4x784x64xf32, #tpu.memory_space<vmem>>, vector<1x1x784x64xf32>
    %2 = vector.shape_cast %1 : vector<1x1x784x64xf32> to vector<784x64xf32>
    %cst = arith.constant dense<0.000000e+00> : vector<16x64xf32>
    %3 = tpu.matmul %0, %2, %cst {dimension_numbers = #tpu.dot_dimension_numbers<[1], [0], [0], [1], [0, 0, 1, 1], [], []>} : vector<16x784xf32>, vector<784x64xf32>, vector<16x64xf32> -> vector<16x64xf32>
    %c0_5 = arith.constant 0 : index
    %c1 = arith.constant 1 : index
    %c0_6 = arith.constant 0 : index
    %c0_7 = arith.constant 0 : index
    %4 = vector.load %arg1[%c0_5, %c1, %c0_6, %c0_7] : memref<1x4x784x64xf32, #tpu.memory_space<vmem>>, vector<1x1x784x64xf32>
    %5 = vector.shape_cast %4 : vector<1x1x784x64xf32> to vector<784x64xf32>
    %cst_8 = arith.constant dense<0.000000e+00> : vector<16x64xf32>
    %6 = tpu.matmul %0, %5, %cst_8 {dimension_numbers = #tpu.dot_dimension_numbers<[1], [0], [0], [1], [0, 0, 1, 1], [], []>} : vector<16x784xf32>, vector<784x64xf32>, vector<16x64xf32> -> vector<16x64xf32>
    %7 = arith.maximumf %3, %6 : vector<16x64xf32>
    %c0_9 = arith.constant 0 : index
    %c2 = arith.constant 2 : index
    %c0_10 = arith.constant 0 : index
    %c0_11 = arith.constant 0 : index
    %8 = vector.load %arg1[%c0_9, %c2, %c0_10, %c0_11] : memref<1x4x784x64xf32, #tpu.memory_space<vmem>>, vector<1x1x784x64xf32>
    %9 = vector.shape_cast %8 : vector<1x1x784x64xf32> to vector<784x64xf32>
    %cst_12 = arith.constant dense<0.000000e+00> : vector<16x64xf32>
    %10 = tpu.matmul %0, %9, %cst_12 {dimension_numbers = #tpu.dot_dimension_numbers<[1], [0], [0], [1], [0, 0, 1, 1], [], []>} : vector<16x784xf32>, vector<784x64xf32>, vector<16x64xf32> -> vector<16x64xf32>
    %11 = arith.maximumf %7, %10 : vector<16x64xf32>
    %c0_13 = arith.constant 0 : index
    %c3 = arith.constant 3 : index
    %c0_14 = arith.constant 0 : index
    %c0_15 = arith.constant 0 : index
    %12 = vector.load %arg1[%c0_13, %c3, %c0_14, %c0_15] : memref<1x4x784x64xf32, #tpu.memory_space<vmem>>, vector<1x1x784x64xf32>
    %13 = vector.shape_cast %12 : vector<1x1x784x64xf32> to vector<784x64xf32>
    %cst_16 = arith.constant dense<0.000000e+00> : vector<16x64xf32>
    %14 = tpu.matmul %0, %13, %cst_16 {dimension_numbers = #tpu.dot_dimension_numbers<[1], [0], [0], [1], [0, 0, 1, 1], [], []>} : vector<16x784xf32>, vector<784x64xf32>, vector<16x64xf32> -> vector<16x64xf32>
    %15 = arith.maximumf %11, %14 : vector<16x64xf32>
    %c0_17 = arith.constant 0 : index
    %c0_18 = arith.constant 0 : index
    %16 = vector.load %arg3[%c0_17, %c0_18] : memref<16x1xf32, #tpu.memory_space<vmem>>, vector<16x1xf32>
    %17 = vector.broadcast %16 : vector<16x1xf32> to vector<16x64xf32>
    %18 = arith.addf %15, %17 : vector<16x64xf32>
    %cst_19 = arith.constant 0.000000e+00 : f32
    %19 = vector.broadcast %cst_19 : f32 to vector<16x64xf32>
    %20 = arith.maximumf %18, %19 : vector<16x64xf32>
    %c0_20 = arith.constant 0 : index
    %c0_21 = arith.constant 0 : index
    %c0_22 = arith.constant 0 : index
    %21 = vector.load %arg6[%c0_20, %c0_21, %c0_22] : memref<1x16x64xf32, #tpu.memory_space<vmem>>, vector<1x16x64xf32>
    %22 = vector.shape_cast %21 : vector<1x16x64xf32> to vector<16x64xf32>
    %23 = vector.shape_cast %20 : vector<16x64xf32> to vector<1x16x64xf32>
    tpu.vector_store %arg6[%c0_20, %c0_21, %c0_22], %23 {strides = array<i32>} : memref<1x16x64xf32, #tpu.memory_space<vmem>>, vector<1x16x64xf32>,
    %c0_23 = arith.constant 0 : index
    %c0_24 = arith.constant 0 : index
    %24 = vector.load %arg4[%c0_23, %c0_24] : memref<16x64xf32, #tpu.memory_space<vmem>>, vector<16x64xf32>
    %25 = arith.mulf %20, %24 : vector<16x64xf32>
    %cst_25 = arith.constant dense<0.000000e+00> : vector<16xf32>
    %26 = vector.multi_reduction <add>, %25, %cst_25 [1] : vector<16x64xf32> to vector<16xf32>
    %27 = vector.shape_cast %26 : vector<16xf32> to vector<16x1xf32>
    %cst_26 = arith.constant dense<0.000000e+00> : vector<1xf32>
    %28 = vector.multi_reduction <add>, %27, %cst_26 [0] : vector<16x1xf32> to vector<1xf32>
    %29 = vector.shape_cast %28 : vector<1xf32> to vector<1x1xf32>
    %c0_27 = arith.constant 0 : index
    %c0_28 = arith.constant 0 : index
    %30 = vector.load %arg5[%c0_27, %c0_28] : memref<1x1xf32, #tpu.memory_space<vmem>>, vector<1x1xf32>
    %31 = arith.addf %29, %30 : vector<1x1xf32>
    %c0_29 = arith.constant 0 : index
    %c0_30 = arith.constant 0 : index
    %c0_31 = arith.constant 0 : index
    %32 = vector.load %arg7[%c0_29, %c0_30, %c0_31] : memref<1x1x1xf32, #tpu.memory_space<vmem>>, vector<1x1x1xf32>
    %33 = vector.shape_cast %32 : vector<1x1x1xf32> to vector<1x1xf32>
    %34 = vector.shape_cast %31 : vector<1x1xf32> to vector<1x1x1xf32>
    tpu.vector_store %arg7[%c0_29, %c0_30, %c0_31], %34 {strides = array<i32>} : memref<1x1x1xf32, #tpu.memory_space<vmem>>, vector<1x1x1xf32>,
    return
  }
  func.func @transform_0(%arg0: i32) -> (i32, i32, i32, i32) {
    %c0_i32 = arith.constant 0 : i32
    %c0_i32_0 = arith.constant 0 : i32
    %c0_i32_1 = arith.constant 0 : i32
    %c0_i32_2 = arith.constant 0 : i32
    return %arg0, %c0_i32, %c0_i32_0, %c0_i32_1 : i32, i32, i32, i32
  }
  func.func @transform_1(%arg0: i32) -> (i32, i32) {
    %c0_i32 = arith.constant 0 : i32
    %c0_i32_0 = arith.constant 0 : i32
    %c0_i32_1 = arith.constant 0 : i32
    return %c0_i32, %c0_i32_0 : i32, i32
  }
  func.func @transform_2(%arg0: i32) -> (i32, i32) {
    %c0_i32 = arith.constant 0 : i32
    %c0_i32_0 = arith.constant 0 : i32
    %c0_i32_1 = arith.constant 0 : i32
    return %c0_i32, %c0_i32_0 : i32, i32
  }
  func.func @transform_3(%arg0: i32) -> (i32, i32) {
    %c0_i32 = arith.constant 0 : i32
    %c0_i32_0 = arith.constant 0 : i32
    %c0_i32_1 = arith.constant 0 : i32
    return %c0_i32, %c0_i32_0 : i32, i32
  }
  func.func @transform_4(%arg0: i32) -> (i32, i32) {
    %c0_i32 = arith.constant 0 : i32
    %c0_i32_0 = arith.constant 0 : i32
    %c0_i32_1 = arith.constant 0 : i32
    return %c0_i32, %c0_i32_0 : i32, i32
  }
  func.func @transform_5(%arg0: i32) -> (i32, i32, i32) {
    %c0_i32 = arith.constant 0 : i32
    %c0_i32_0 = arith.constant 0 : i32
    %c0_i32_1 = arith.constant 0 : i32
    return %arg0, %c0_i32, %c0_i32_0 : i32, i32, i32
  }
  func.func @transform_6(%arg0: i32) -> (i32, i32, i32) {
    %c0_i32 = arith.constant 0 : i32
    %c0_i32_0 = arith.constant 0 : i32
    %c0_i32_1 = arith.constant 0 : i32
    return %arg0, %c0_i32, %c0_i32_0 : i32, i32, i32
  }
}

</mosaic_0001>

<bundles_post_ra>
// kernel: cnn2_forward.2
= control target key start
LH: loop header
LB: loop body
LE: loop exit
PB: predicated region body
PF: predicated region fallthrough
CT: control target
= control target key end

     0   :  { %s1667_s12 = smov 0   ;;  %s2046_s0 = inlined_call_operand.vmem [shape: f32[2,4,147,324], index: 0, kind: input, shape index: {}]   ;;  %s2047_s1 = inlined_call_operand.vmem [shape: f32[16,147], index: 1, kind: input, shape index: {}]   ;;  %s2048_s2 = inlined_call_operand.vmem [shape: f32[16,1], index: 2, kind: input, shape index: {}]   ;;  %s2049_s3 = inlined_call_operand.vmem [shape: f32[2,16,324], index: 3, kind: output, shape index: {}]  }
   0x1 LB: > { %s1162_s13 = sadd.s32 4294967295, %s1642_s12   ;;  %p1166_p0 = scmp.ge.s32.totalorder %s1642_s12, 1  ;;  %s1642_s12 = sphi %s1667_s12, %s13_s12  }
   0x2   : > { %p137_p1 = scmp.lt.s32.totalorder %s1642_s12, 3 }
   0x4   : > { %p138_p2 = pnand %p1166_p0, %p137_p1 }
   0x5   : > { %p161_p3 = scmp.lt.s32.totalorder (!%p138_p2), %s1162_s13, 1  ;;  %v1678_v0 = vld [vmem:[%s2047_s1 + $0x8] sm:$0xff] (!%p138_p2)  ;;  %vm232_vm0 = vcmask (!%p138_p2), 154624   ;;  %v1644_v1 = vmov (!%p138_p2), 0.0|0.0   ;;  %vm239_vm1 = vcmask (!%p138_p2), 1042432   ;;  %vm1102_vm2 = vcmask (!%p138_p2), 556032  }
   0x6   : > { %141 = sbr.rel (%p138_p2) target bundleno = 399 (0x18f), region = 32  ;;  %1406 = vmatprep.subr.bf16.mxu1 (!%p138_p2), %v1644_v1  ;;  %1171 = vmatprep.mubr.msk.f32.mxu0 (!%p138_p2), %vm232_vm0, %v1678_v0 }
   0x7   : > { %1174 = vmatprep.mubr.msk.f32.mxu1 (!%p138_p2), %vm232_vm0, %v1678_v0 }
   0xd   : > { %s2051_s13 = smov (!%p161_p3, %s1162_s13), 1 }
   0xe   : > { %s1622_s16 = smul.u32 1824, %s2051_s13 }
   0xf   : > { %s1623_s30 = smul.u32 48, %s2051_s13 }
  0x10   : > { %s1691_s19 = scalar_lea.vmem %s2046_s0, %s1622_s16 }
  0x11   : > { %v176_v2 = vld [vmem:[%s1691_s19 + $0x8] sm:$0xff]  ;;  %v179_v3 = vld [vmem:[%s1691_s19 + $0x20] sm:$0xff]  ;;  %v177_v4 = vld [vmem:[%s1691_s19 + $0x10] sm:$0xff]  ;;  %s170_s6 = scalar_lea.vmem %s2049_s3, %s1623_s30 }
  0x12   : > { %v1370_v5 = vpack.c.bf16 %v179_v3, %v176_v2  ;;  %v180_v6 = vld [vmem:[%s1691_s19 + $0x28] sm:$0xff]  ;;  %v175_v7 = vld [vmem:[%s1691_s19] sm:$0xff]  ;;  %v178_v8 = vld [vmem:[%s1691_s19 + $0x18] sm:$0xff] }
  0x13   : > { %v1407_v9 = vpack.c.bf16 %v180_v6, %v177_v4  ;;  %v1372_v10 = vpack.c.bf16 %v178_v8, %v175_v7  ;;  %v182_v11 = vld [vmem:[%s1691_s19 + $0x38] sm:$0xff]  ;;  %v185_v12 = vld [vmem:[%s1691_s19 + $0x50] sm:$0xff]  ;;  %v183_v13 = vld [vmem:[%s1691_s19 + $0x40] sm:$0xff] }
  0x14   : > { %1371 = vmatprep.subr.bf16.mxu0 %v1370_v5  ;;  %v1374_v14 = vpack.c.bf16 %v185_v12, %v182_v11  ;;  %v186_v15 = vld [vmem:[%s1691_s19 + $0x58] sm:$0xff]  ;;  %v181_v16 = vld [vmem:[%s1691_s19 + $0x30] sm:$0xff]  ;;  %v184_v17 = vld [vmem:[%s1691_s19 + $0x48] sm:$0xff] }
  0x15   : > { %1408 = vmatpush1.bf16.msra.mxu1 %v1407_v9  ;;  %1373 = vmatpush1.bf16.msra.mxu0 %v1372_v10  ;;  %v1410_v18 = vpack.c.bf16 %v186_v15, %v183_v13  ;;  %v1376_v19 = vpack.c.bf16 %v184_v17, %v181_v16  ;;  %v188_v20 = vld [vmem:[%s1691_s19 + $0x68] sm:$0xff]  ;;  %v191_v21 = vld [vmem:[%s1691_s19 + $0x80] sm:$0xff]  ;;  %v189_v22 = vld [vmem:[%s1691_s19 + $0x70] sm:$0xff] }
  0x16   : > { %1409 = vmatprep.subr.bf16.mxu1 %v1644_v1  ;;  %1375 = vmatprep.subr.bf16.mxu0 %v1374_v14  ;;  %v1378_v23 = vpack.c.bf16 %v191_v21, %v188_v20  ;;  %v192_v24 = vld [vmem:[%s1691_s19 + $0x88] sm:$0xff]  ;;  %v187_v25 = vld [vmem:[%s1691_s19 + $0x60] sm:$0xff]  ;;  %v190_v26 = vld [vmem:[%s1691_s19 + $0x78] sm:$0xff] }
  0x17   : > { %v194_v27 = vld [vmem:[%s1691_s19 + $0x98] sm:$0xff]  ;;  %v197_v28 = vld [vmem:[%s1691_s19 + $0xb0] sm:$0xff]  ;;  %v1413_v29 = vpack.c.bf16 %v192_v24, %v189_v22  ;;  %v1380_v30 = vpack.c.bf16 %v190_v26, %v187_v25  ;;  %v195_v31 = vld [vmem:[%s1691_s19 + $0xa0] sm:$0xff]  ;;  %v1645_v26 = vmov 0  }
  0x18   : > { %v1382_v32 = vpack.c.bf16 %v197_v28, %v194_v27  ;;  %v198_v33 = vld [vmem:[%s1691_s19 + $0xb8] sm:$0xff]  ;;  %v193_v34 = vld [vmem:[%s1691_s19 + $0x90] sm:$0xff]  ;;  %v196_v35 = vld [vmem:[%s1691_s19 + $0xa8] sm:$0xff]  ;;  %1635 = vset.pattern.permute.xlu0 %v1645_v26 }
  0x19   : > { %1411 = vmatpush1.bf16.msra.mxu1 %v1410_v18  ;;  %1377 = vmatpush1.bf16.msra.mxu0 %v1376_v19  ;;  %v200_v36 = vld [vmem:[%s1691_s19 + $0xc8] sm:$0xff]  ;;  %v203_v37 = vld [vmem:[%s1691_s19 + $0xe0] sm:$0xff]  ;;  %v1416_v38 = vpack.c.bf16 %v198_v33, %v195_v31  ;;  %v1384_v39 = vpack.c.bf16 %v196_v35, %v193_v34  ;;  %v201_v40 = vld [vmem:[%s1691_s19 + $0xd0] sm:$0xff] }
  0x1a   : > { %1412 = vmatprep.subr.bf16.mxu1 %v1644_v1  ;;  %1379 = vmatprep.subr.bf16.mxu0 %v1378_v23  ;;  %v1386_v41 = vpack.c.bf16 %v203_v37, %v200_v36  ;;  %v204_v42 = vld [vmem:[%s1691_s19 + $0xe8] sm:$0xff]  ;;  %v199_v43 = vld [vmem:[%s1691_s19 + $0xc0] sm:$0xff]  ;;  %v202_v44 = vld [vmem:[%s1691_s19 + $0xd8] sm:$0xff] }
  0x1b   : > { %v206_v45 = vld [vmem:[%s1691_s19 + $0xf8] sm:$0xff]  ;;  %v209_v46 = vld [vmem:[%s1691_s19 + $0x110] sm:$0xff]  ;;  %v1419_v47 = vpack.c.bf16 %v204_v42, %v201_v40  ;;  %v1388_v48 = vpack.c.bf16 %v202_v44, %v199_v43  ;;  %v207_v49 = vld [vmem:[%s1691_s19 + $0x100] sm:$0xff] }
  0x1c   : > { %v1390_v50 = vpack.c.bf16 %v209_v46, %v206_v45  ;;  %v210_v51 = vld [vmem:[%s1691_s19 + $0x118] sm:$0xff]  ;;  %v205_v52 = vld [vmem:[%s1691_s19 + $0xf0] sm:$0xff]  ;;  %v208_v53 = vld [vmem:[%s1691_s19 + $0x108] sm:$0xff] }
  0x1d   : > { %1414 = vmatpush1.bf16.msra.mxu1 %v1413_v29  ;;  %1381 = vmatpush1.bf16.msra.mxu0 %v1380_v30  ;;  %v212_v54 = vld [vmem:[%s1691_s19 + $0x128] sm:$0xff]  ;;  %v215_v55 = vld [vmem:[%s1691_s19 + $0x140] sm:$0xff]  ;;  %v1422_v56 = vpack.c.bf16 %v210_v51, %v207_v49  ;;  %v1392_v57 = vpack.c.bf16 %v208_v53, %v205_v52  ;;  %v213_v58 = vld [vmem:[%s1691_s19 + $0x130] sm:$0xff]  ;;  %v1646_v30 = vmov 0.0  }
  0x1e   : > { %1415 = vmatprep.subr.bf16.mxu1 %v1644_v1  ;;  %1383 = vmatprep.subr.bf16.mxu0 %v1382_v32  ;;  %v1394_v59 = vpack.c.bf16 %v215_v55, %v212_v54  ;;  %v216_v60 = vld [vmem:[%s1691_s19 + $0x148] sm:$0xff]  ;;  %v211_v61 = vld [vmem:[%s1691_s19 + $0x120] sm:$0xff]  ;;  %v214_v62 = vld [vmem:[%s1691_s19 + $0x138] sm:$0xff] }
  0x1f   : > { %v218_v63 = vld [vmem:[%s1691_s19 + $0x158] sm:$0xff]  ;;  %v221_v2 = vld [vmem:[%s1691_s19 + $0x170] sm:$0xff]  ;;  %v1425_v3 = vpack.c.bf16 %v216_v60, %v213_v58  ;;  %v1396_v4 = vpack.c.bf16 %v214_v62, %v211_v61  ;;  %v219_v5 = vld [vmem:[%s1691_s19 + $0x160] sm:$0xff] }
  0x20   : > { %v1398_v6 = vpack.c.bf16 %v221_v2, %v218_v63  ;;  %v222_v7 = vld [vmem:[%s1691_s19 + $0x178] sm:$0xff]  ;;  %v217_v8 = vld [vmem:[%s1691_s19 + $0x150] sm:$0xff]  ;;  %v220_v9 = vld [vmem:[%s1691_s19 + $0x168] sm:$0xff] }
  0x21   : > { %1417 = vmatpush1.bf16.msra.mxu1 %v1416_v38  ;;  %1385 = vmatpush1.bf16.msra.mxu0 %v1384_v39  ;;  %v224_v10 = vld [vmem:[%s1691_s19 + $0x188] sm:$0xff]  ;;  %v227_v11 = vld [vmem:[%s1691_s19 + $0x1a0] sm:$0xff]  ;;  %v1428_v12 = vpack.c.bf16 %v222_v7, %v219_v5  ;;  %v1400_v13 = vpack.c.bf16 %v220_v9, %v217_v8  ;;  %v225_v14 = vld [vmem:[%s1691_s19 + $0x190] sm:$0xff] }
  0x22   : > { %1418 = vmatprep.subr.bf16.mxu1 %v1644_v1  ;;  %1387 = vmatprep.subr.bf16.mxu0 %v1386_v41  ;;  %v1402_v15 = vpack.c.bf16 %v227_v11, %v224_v10  ;;  %v228_v16 = vld [vmem:[%s1691_s19 + $0x1a8] sm:$0xff]  ;;  %v223_v17 = vld [vmem:[%s1691_s19 + $0x180] sm:$0xff]  ;;  %v226_v18 = vld [vmem:[%s1691_s19 + $0x198] sm:$0xff] }
  0x23   : > { %v1431_v19 = vpack.c.bf16 %v228_v16, %v225_v14  ;;  %v1404_v20 = vpack.c.bf16 %v226_v18, %v223_v17  ;;  %v230_v21 = vld [vmem:[%s1691_s19 + $0x1b8] sm:$0x7]  ;;  %v231_v22 = vld [vmem:[%s1691_s19 + $0x1c0] sm:$0x7]  ;;  %v1177_v23 = vld [vmem:[%s1691_s19 + $0x1d0] sm:$0xff] }
  0x24   : > { %v1180_v24 = vld [vmem:[%s1691_s19 + $0x1e8] sm:$0xff]  ;;  %v1178_v25 = vld [vmem:[%s1691_s19 + $0x1d8] sm:$0xff]  ;;  %v1181_v27 = vld [vmem:[%s1691_s19 + $0x1f0] sm:$0xff] }
  0x25   : > { %1420 = vmatpush1.bf16.msra.mxu1 %v1419_v47  ;;  %1389 = vmatpush1.bf16.msra.mxu0 %v1388_v48  ;;  %v1176_v28 = vld [vmem:[%s1691_s19 + $0x1c8] sm:$0xff]  ;;  %v1179_v29 = vld [vmem:[%s1691_s19 + $0x1e0] sm:$0xff]  ;;  %v229_v31 = vld [vmem:[%s1691_s19 + $0x1b0] sm:$0x7]  ;;  %v1433_v35 = vpack.c.bf16 %v1180_v24, %v1177_v23  ;;  %v1470_v36 = vpack.c.bf16 %v1181_v27, %v1178_v25 }
  0x26   : > { %1421 = vmatprep.subr.bf16.mxu1 %v1644_v1  ;;  %1391 = vmatprep.subr.bf16.mxu0 %v1390_v50  ;;  %v1183_v32 = vld [vmem:[%s1691_s19 + $0x200] sm:$0xff]  ;;  %v1186_v33 = vld [vmem:[%s1691_s19 + $0x218] sm:$0xff]  ;;  %v1435_v37 = vpack.c.bf16 %v1179_v29, %v1176_v28  ;;  %v1184_v38 = vld [vmem:[%s1691_s19 + $0x208] sm:$0xff] }
  0x27   : > { %v1771_v34 = vld [vmem:[%s2047_s1] sm:$0xff]  ;;  %v1437_v39 = vpack.c.bf16 %v1186_v33, %v1183_v32  ;;  %v1182_v41 = vld [vmem:[%s1691_s19 + $0x1f8] sm:$0xff]  ;;  %v1185_v42 = vld [vmem:[%s1691_s19 + $0x210] sm:$0xff] }
  0x28   : > { %v1187_v40 = vld [vmem:[%s1691_s19 + $0x220] sm:$0xff]  ;;  %v1189_v43 = vld [vmem:[%s1691_s19 + $0x230] sm:$0xff]  ;;  %v1192_v44 = vld [vmem:[%s1691_s19 + $0x248] sm:$0xff]  ;;  %v1439_v47 = vpack.c.bf16 %v1185_v42, %v1182_v41 }
  0x29   : > { %1423 = vmatpush1.bf16.msra.mxu1 %v1422_v56  ;;  %1393 = vmatpush1.bf16.msra.mxu0 %v1392_v57  ;;  %v1787_v45 = vld [vmem:[%s2047_s1 + $0x18] sm:$0xff]  ;;  %v1473_v46 = vpack.c.bf16 %v1187_v40, %v1184_v38  ;;  %v1793_v49 = vld [vmem:[%s2047_s1 + $0x10] sm:$0xff]  ;;  %v1441_v50 = vpack.c.bf16 %v1192_v44, %v1189_v43  ;;  %v1188_v52 = vld [vmem:[%s1691_s19 + $0x228] sm:$0xff] }
  0x2a   : > { %1424 = vmatprep.subr.bf16.mxu1 %v1644_v1  ;;  %1395 = vmatprep.subr.bf16.mxu0 %v1394_v59  ;;  %v1190_v48 = vld [vmem:[%s1691_s19 + $0x238] sm:$0xff]  ;;  %v1193_v51 = vld [vmem:[%s1691_s19 + $0x250] sm:$0xff]  ;;  %v1191_v53 = vld [vmem:[%s1691_s19 + $0x240] sm:$0xff] }
  0x2b   : > { %v1195_v54 = vld [vmem:[%s1691_s19 + $0x260] sm:$0xff]  ;;  %v1198_v55 = vld [vmem:[%s1691_s19 + $0x278] sm:$0xff]  ;;  %v1476_v56 = vpack.c.bf16 %v1193_v51, %v1190_v48  ;;  %v1443_v57 = vpack.c.bf16 %v1191_v53, %v1188_v52  ;;  %v1196_v58 = vld [vmem:[%s1691_s19 + $0x268] sm:$0xff] }
  0x2c   : > { %v1445_v59 = vpack.c.bf16 %v1198_v55, %v1195_v54  ;;  %v1199_v60 = vld [vmem:[%s1691_s19 + $0x280] sm:$0xff]  ;;  %v1194_v61 = vld [vmem:[%s1691_s19 + $0x258] sm:$0xff]  ;;  %v1197_v62 = vld [vmem:[%s1691_s19 + $0x270] sm:$0xff] }
  0x2d   : > { %1426 = vmatpush1.bf16.msra.mxu1 %v1425_v3  ;;  %1397 = vmatpush1.bf16.msra.mxu0 %v1396_v4  ;;  %v1201_v63 = vld [vmem:[%s1691_s19 + $0x290] sm:$0xff]  ;;  %v1204_v2 = vld [vmem:[%s1691_s19 + $0x2a8] sm:$0xff]  ;;  %v1479_v3 = vpack.c.bf16 %v1199_v60, %v1196_v58  ;;  %v1447_v4 = vpack.c.bf16 %v1197_v62, %v1194_v61  ;;  %v1202_v5 = vld [vmem:[%s1691_s19 + $0x298] sm:$0xff] }
  0x2e   : > { %1427 = vmatprep.subr.bf16.mxu1 %v1644_v1  ;;  %1399 = vmatprep.subr.bf16.mxu0 %v1398_v6  ;;  %v1449_v6 = vpack.c.bf16 %v1204_v2, %v1201_v63  ;;  %v1205_v7 = vld [vmem:[%s1691_s19 + $0x2b0] sm:$0xff]  ;;  %v1200_v8 = vld [vmem:[%s1691_s19 + $0x288] sm:$0xff]  ;;  %v1203_v9 = vld [vmem:[%s1691_s19 + $0x2a0] sm:$0xff] }
  0x2f   : > { %v1207_v10 = vld [vmem:[%s1691_s19 + $0x2c0] sm:$0xff]  ;;  %v1210_v11 = vld [vmem:[%s1691_s19 + $0x2d8] sm:$0xff]  ;;  %v1208_v14 = vld [vmem:[%s1691_s19 + $0x2c8] sm:$0xff] }
  0x30   : > { %v1211_v16 = vld [vmem:[%s1691_s19 + $0x2e0] sm:$0xff]  ;;  %v1206_v17 = vld [vmem:[%s1691_s19 + $0x2b8] sm:$0xff]  ;;  %v1209_v18 = vld [vmem:[%s1691_s19 + $0x2d0] sm:$0xff] }
  0x31   : > { %1429 = vmatpush1.bf16.msra.mxu1 %v1428_v12  ;;  %1401 = vmatpush1.bf16.msra.mxu0 %v1400_v13  ;;  %v1482_v12 = vpack.c.bf16 %v1205_v7, %v1202_v5  ;;  %v1451_v13 = vpack.c.bf16 %v1203_v9, %v1200_v8  ;;  %v1214_v23 = vld [vmem:[%s1691_s19 + $0x2f8] sm:$0xff]  ;;  %v1217_v25 = vld [vmem:[%s1691_s19 + $0x310] sm:$0xff]  ;;  %v1212_v26 = vld [vmem:[%s1691_s19 + $0x2e8] sm:$0xff] }
  0x32   : > { %1430 = vmatprep.subr.bf16.mxu1 %v1644_v1  ;;  %1403 = vmatprep.subr.bf16.mxu0 %v1402_v15  ;;  %v1453_v15 = vpack.c.bf16 %v1210_v11, %v1207_v10  ;;  %v1215_v27 = vld [vmem:[%s1691_s19 + $0x300] sm:$0xff]  ;;  %v1222_v29 = vld [vmem:[%s1691_s19 + $0x338] sm:$0xff]  ;;  %v1220_v33 = vld [vmem:[%s1691_s19 + $0x328] sm:$0xff] }
  0x33   : > { %v1219_v28 = vld [vmem:[%s1691_s19 + $0x320] sm:$0xff]  ;;  %v1459_v32 = vpack.c.bf16 %v1215_v27, %v1212_v26  ;;  %v1221_v38 = vld [vmem:[%s1691_s19 + $0x330] sm:$0xff]  ;;  %v1228_v40 = vld [vmem:[%s1691_s19 + $0x368] sm:$0xff] }
  0x34   : > { %v1226_v43 = vld [vmem:[%s1691_s19 + $0x358] sm:$0xff]  ;;  %v1227_v48 = vld [vmem:[%s1691_s19 + $0x360] sm:$0xff]  ;;  %v1244_v54 = vld [vmem:[%s1691_s19 + $0x3b0] sm:$0xff] }
  0x35   : > { %1432 = vmatpush1.bf16.msra.mxu1 %v1431_v19  ;;  %1405 = vmatpush1.bf16.msra.mxu0 %v1404_v20  ;;  %v1213_v19 = vld [vmem:[%s1691_s19 + $0x2f0] sm:$0xff]  ;;  %v1216_v20 = vld [vmem:[%s1691_s19 + $0x308] sm:$0xff]  ;;  %v1231_v52 = vld [vmem:[%s1691_s19 + $0x380] sm:$0x7] }
  0x36   : > { %362 = vmatprep.subr.mxu1 %v1646_v30  ;;  %1169 = vmatprep.subr.msk.mxu0 %vm239_vm1, %v230_v21  ;;  %v1485_v21 = vpack.c.bf16 %v1211_v16, %v1208_v14  ;;  %v1457_v24 = vpack.c.bf16 %v1216_v20, %v1213_v19  ;;  %v1241_v53 = vld [vmem:[%s1691_s19 + $0x398] sm:$0xff]  ;;  %v1242_v55 = vld [vmem:[%s1691_s19 + $0x3a0] sm:$0xff]  ;;  %v1243_v58 = vld [vmem:[%s1691_s19 + $0x3a8] sm:$0xff] }
  0x37   : > { %v1230_v60 = vld [vmem:[%s1691_s19 + $0x378] sm:$0x7]  ;;  %v1076_v61 = vld [vmem:[%s2048_s2] sm:$0xff]  ;;  %v1496_v62 = vpack.c.bf16 %v1244_v54, %v1241_v53  ;;  %v1248_v5 = vld [vmem:[%s1691_s19 + $0x3d0] sm:$0xff] }
  0x38   : > { %1080 = vperm.xlu0 %1635, %v1076_v61   ;;  %v1246_v7 = vld [vmem:[%s1691_s19 + $0x3c0] sm:$0xff]  ;;  %v1249_v8 = vld [vmem:[%s1691_s19 + $0x3d8] sm:$0xff]  ;;  %v1256_v10 = vld [vmem:[%s1691_s19 + $0x410] sm:$0xff] }
  0x39   : > { %1173 = vmatpush1.msk.msra.mxu1 %vm239_vm1, %v231_v22  ;;  %1170 = vmatpush1.msk.msra.mxu0 %vm239_vm1, %v229_v31  ;;  %v1455_v22 = vpack.c.bf16 %v1209_v18, %v1206_v17  ;;  %v1488_v31 = vpack.c.bf16 %v1217_v25, %v1214_v23  ;;  %v1253_v9 = vld [vmem:[%s1691_s19 + $0x3f8] sm:$0xff]  ;;  %v1254_v14 = vld [vmem:[%s1691_s19 + $0x400] sm:$0xff]  ;;  %v1252_v17 = vld [vmem:[%s1691_s19 + $0x3f0] sm:$0xff] }
  0x3a   : > { %1469 = vmatprep.subr.bf16.mxu1 %v1644_v1  ;;  %314 = vmatmul.mubr.f32.vlgmr.msra.gmra.mrb[0].mxu0 %v1771_v34  ;;  %v1257_v16 = vld [vmem:[%s1691_s19 + $0x418] sm:$0xff]  ;;  %v1255_v18 = vld [vmem:[%s1691_s19 + $0x408] sm:$0xff]  ;;  %v1262_v20 = vld [vmem:[%s1691_s19 + $0x440] sm:$0xff] }
  0x3b   : > { %391 = vmatmul.mubr.f32.vlgmr.msra.gmra.mrb[0].mxu1 %v1771_v34  ;;  %1434 = vmatprep.subr.bf16.mxu0 %v1433_v35  ;;  %v1461_v35 = vpack.c.bf16 %v1222_v29, %v1219_v28  ;;  %v1259_v19 = vld [vmem:[%s1691_s19 + $0x428] sm:$0xff]  ;;  %v1260_v23 = vld [vmem:[%s1691_s19 + $0x430] sm:$0xff]  ;;  %v1258_v27 = vld [vmem:[%s1691_s19 + $0x420] sm:$0xff] }
  0x3c   : > { %1471 = vmatpush1.bf16.msra.mxu1 %v1470_v36  ;;  %1436 = vmatpush1.bf16.msra.mxu0 %v1435_v37  ;;  %v1223_v36 = vld [vmem:[%s1691_s19 + $0x340] sm:$0xff]  ;;  %v1218_v37 = vld [vmem:[%s1691_s19 + $0x318] sm:$0xff]  ;;  %v1508_v25 = vpack.c.bf16 %v1262_v20, %v1259_v19  ;;  %v1263_v26 = vld [vmem:[%s1691_s19 + $0x448] sm:$0xff] }
  0x3d   : > { %1472 = vmatprep.subr.bf16.mxu1 %v1644_v1  ;;  %1438 = vmatprep.subr.bf16.mxu0 %v1437_v39  ;;  %v1225_v39 = vld [vmem:[%s1691_s19 + $0x350] sm:$0xff]  ;;  %v1491_v41 = vpack.c.bf16 %v1223_v36, %v1220_v33  ;;  %v1463_v42 = vpack.c.bf16 %v1221_v38, %v1218_v37  ;;  %v1261_v28 = vld [vmem:[%s1691_s19 + $0x438] sm:$0xff]  ;;  %v1286_v61 = vld [vmem:[%s1691_s19 + $0x500] sm:$0xff] }
  0x3e   : > { %1175 = vmatprep.mubr.msk.f32.mxu1 %vm232_vm0, %v1787_v45  ;;  %1172 = vmatprep.mubr.msk.f32.mxu0 %vm232_vm0, %v1787_v45  ;;  %v1465_v44 = vpack.c.bf16 %v1228_v40, %v1225_v39  ;;  %v1265_v29 = vld [vmem:[%s1691_s19 + $0x458] sm:$0xff]  ;;  %v1510_v33 = vpack.c.bf16 %v1261_v28, %v1258_v27  ;;  %v1264_v38 = vld [vmem:[%s1691_s19 + $0x450] sm:$0xff]  ;;  %v1267_v39 = vld [vmem:[%s1691_s19 + $0x468] sm:$0xff] }
  0x3f   : > { %396 = vmatmul.mubr.f32.gmra.mrb[2].mxu1 %v1793_v49  ;;  %320 = vmatmul.mubr.f32.gmra.mrb[2].mxu0 %v1793_v49  ;;  %v1269_v37 = vld [vmem:[%s1691_s19 + $0x478] sm:$0xff]  ;;  %v1271_v40 = vld [vmem:[%s1691_s19 + $0x488] sm:$0xff]  ;;  %v1305_v19 = vld [vmem:[%s1691_s19 + $0x560] sm:$0xff] }
  0x40   : > { %1474 = vmatpush1.bf16.msra.mxu1 %v1473_v46  ;;  %1440 = vmatpush1.bf16.msra.mxu0 %v1439_v47  ;;  %v1229_v46 = vld [vmem:[%s1691_s19 + $0x370] sm:$0xff]  ;;  %v1224_v47 = vld [vmem:[%s1691_s19 + $0x348] sm:$0xff]  ;;  %v1308_v20 = vld [vmem:[%s1691_s19 + $0x578] sm:$0xff] }
  0x41   : > { %1475 = vmatprep.subr.bf16.mxu1 %v1644_v1  ;;  %1442 = vmatprep.subr.bf16.mxu0 %v1441_v50  ;;  %v1494_v50 = vpack.c.bf16 %v1229_v46, %v1226_v43  ;;  %v1467_v51 = vpack.c.bf16 %v1227_v48, %v1224_v47  ;;  %v1514_v43 = vpack.c.bf16 %v1267_v39, %v1264_v38  ;;  %v1275_v47 = vld [vmem:[%s1691_s19 + $0x4a8] sm:$0xff]  ;;  %v1270_v48 = vld [vmem:[%s1691_s19 + $0x480] sm:$0xff]  ;;  %v1320_v39 = vld [vmem:[%s1691_s19 + $0x5d8] sm:$0xff] }
  0x42   : > { %1238 = vmatprep.mubr.msk.f32.mxu1 %vm232_vm0, %v1678_v0  ;;  %1235 = vmatprep.mubr.msk.f32.mxu0 %vm232_vm0, %v1678_v0  ;;  %v1559_v27 = vpack.c.bf16 %v1308_v20, %v1305_v19  ;;  %v1317_v38 = vld [vmem:[%s1691_s19 + $0x5c0] sm:$0xff] }
  0x43   : > { %v1345_v20 = vld [vmem:[%s1691_s19 + $0x6a0] sm:$0xff] }
  0x44   : > { %1477 = vmatpush1.bf16.msra.mxu1 %v1476_v56  ;;  %1444 = vmatpush1.bf16.msra.mxu0 %v1443_v57  ;;  %v1245_v56 = vld [vmem:[%s1691_s19 + $0x3b8] sm:$0xff]  ;;  %v1240_v57 = vld [vmem:[%s1691_s19 + $0x390] sm:$0xff] }
  0x45   : > { %1478 = vmatprep.subr.bf16.mxu1 %v1644_v1  ;;  %1446 = vmatprep.subr.bf16.mxu0 %v1445_v59  ;;  %v1232_v59 = vld [vmem:[%s1691_s19 + $0x388] sm:$0x7]  ;;  %v1533_v63 = vpack.c.bf16 %v1245_v56, %v1242_v55  ;;  %v1498_v2 = vpack.c.bf16 %v1243_v58, %v1240_v57  ;;  %v1278_v55 = vld [vmem:[%s1691_s19 + $0x4c0] sm:$0xff]  ;;  %v1281_v57 = vld [vmem:[%s1691_s19 + $0x4d8] sm:$0xff] }
  0x46   : > { %v1276_v58 = vld [vmem:[%s1691_s19 + $0x4b0] sm:$0xff] }
  0x48   : > { %1480 = vmatpush1.bf16.msra.mxu1 %v1479_v3  ;;  %1448 = vmatpush1.bf16.msra.mxu0 %v1447_v4  ;;  %v1247_v3 = vld [vmem:[%s1691_s19 + $0x3c8] sm:$0xff]  ;;  %v1250_v4 = vld [vmem:[%s1691_s19 + $0x3e0] sm:$0xff] }
  0x49   : > { %1481 = vmatprep.subr.bf16.mxu1 %v1644_v1  ;;  %1450 = vmatprep.subr.bf16.mxu0 %v1449_v6  ;;  %v1251_v6 = vld [vmem:[%s1691_s19 + $0x3e8] sm:$0xff]  ;;  %v1500_v11 = vpack.c.bf16 %v1250_v4, %v1247_v3 }
  0x4a   : > { %v1287_v4 = vld [vmem:[%s1691_s19 + $0x508] sm:$0xff] }
  0x4c   : > { %1483 = vmatpush1.bf16.msra.mxu1 %v1482_v12  ;;  %1452 = vmatpush1.bf16.msra.mxu0 %v1451_v13  ;;  %v1536_v12 = vpack.c.bf16 %v1251_v6, %v1248_v5  ;;  %v1502_v13 = vpack.c.bf16 %v1249_v8, %v1246_v7  ;;  %v1282_v5 = vld [vmem:[%s1691_s19 + $0x4e0] sm:$0xff]  ;;  %v1285_v6 = vld [vmem:[%s1691_s19 + $0x4f8] sm:$0xff]  ;;  %v1292_v8 = vld [vmem:[%s1691_s19 + $0x530] sm:$0xff] }
  0x4d   : > { %1484 = vmatprep.subr.bf16.mxu1 %v1644_v1  ;;  %1454 = vmatprep.subr.bf16.mxu0 %v1453_v15  ;;  %v1504_v15 = vpack.c.bf16 %v1256_v10, %v1253_v9  ;;  %v1289_v7 = vld [vmem:[%s1691_s19 + $0x518] sm:$0xff]  ;;  %v1526_v10 = vpack.c.bf16 %v1285_v6, %v1282_v5  ;;  %v1331_v5 = vld [vmem:[%s1691_s19 + $0x630] sm:$0xff] }
  0x4e   : > { %v1335_v6 = vld [vmem:[%s1691_s19 + $0x650] sm:$0xff] }
  0x50   : > { %1486 = vmatpush1.bf16.msra.mxu1 %v1485_v21  ;;  %1456 = vmatpush1.bf16.msra.mxu0 %v1455_v22  ;;  %v1539_v21 = vpack.c.bf16 %v1257_v16, %v1254_v14  ;;  %v1506_v22 = vpack.c.bf16 %v1255_v18, %v1252_v17  ;;  %v1288_v14 = vld [vmem:[%s1691_s19 + $0x510] sm:$0xff]  ;;  %v1295_v18 = vld [vmem:[%s1691_s19 + $0x548] sm:$0x7] }
  0x51   : > { %1487 = vmatprep.subr.bf16.mxu1 %v1644_v1  ;;  %1458 = vmatprep.subr.bf16.mxu0 %v1457_v24  ;;  %v1077_v24 = vld [vmem:[%s2048_s2 + $0x8] sm:$0xff] }
  0x52   : > { %1085 = vperm.xlu0 %1635, %v1077_v24   ;;  %v1307_v24 = vld [vmem:[%s1691_s19 + $0x570] sm:$0xff] }
  0x54   : > { %1489 = vmatpush1.bf16.msra.mxu1 %v1488_v31  ;;  %1460 = vmatpush1.bf16.msra.mxu0 %v1459_v32  ;;  %v1268_v31 = vld [vmem:[%s1691_s19 + $0x470] sm:$0xff]  ;;  %v1542_v32 = vpack.c.bf16 %v1263_v26, %v1260_v23  ;;  %v1304_v23 = vld [vmem:[%s1691_s19 + $0x558] sm:$0xff]  ;;  %v1294_v26 = vld [vmem:[%s1691_s19 + $0x540] sm:$0x7] }
  0x55   : > { %1490 = vmatprep.subr.bf16.mxu1 %v1644_v1  ;;  %1462 = vmatprep.subr.bf16.mxu0 %v1461_v35  ;;  %v1266_v35 = vld [vmem:[%s1691_s19 + $0x460] sm:$0xff]  ;;  %v1512_v36 = vpack.c.bf16 %v1268_v31, %v1265_v29  ;;  %v1561_v29 = vpack.c.bf16 %v1307_v24, %v1304_v23  ;;  %v1311_v31 = vld [vmem:[%s1691_s19 + $0x590] sm:$0xff]  ;;  %v1350_v24 = vld [vmem:[%s1691_s19 + $0x6c8] sm:$0xff] }
  0x56   : > { %v1347_v23 = vld [vmem:[%s1691_s19 + $0x6b0] sm:$0xff] }
  0x58   : > { %1492 = vmatpush1.bf16.msra.mxu1 %v1491_v41  ;;  %1464 = vmatpush1.bf16.msra.mxu0 %v1463_v42  ;;  %v1274_v41 = vld [vmem:[%s1691_s19 + $0x4a0] sm:$0xff]  ;;  %v1545_v42 = vpack.c.bf16 %v1269_v37, %v1266_v35  ;;  %v1315_v35 = vld [vmem:[%s1691_s19 + $0x5b0] sm:$0xff] }
  0x59   : > { %1493 = vmatprep.subr.bf16.mxu1 %v1644_v1  ;;  %1466 = vmatprep.subr.bf16.mxu0 %v1465_v44  ;;  %v1272_v44 = vld [vmem:[%s1691_s19 + $0x490] sm:$0xff]  ;;  %v1516_v46 = vpack.c.bf16 %v1274_v41, %v1271_v40  ;;  %v1313_v37 = vld [vmem:[%s1691_s19 + $0x5a0] sm:$0xff] }
  0x5a   : > { %v1548_v53 = vpack.c.bf16 %v1275_v47, %v1272_v44  ;;  %v1567_v44 = vpack.c.bf16 %v1320_v39, %v1317_v38  ;;  %v1316_v47 = vld [vmem:[%s1691_s19 + $0x5b8] sm:$0xff]  ;;  %v1354_v38 = vld [vmem:[%s1691_s19 + $0x6e8] sm:$0xff] }
  0x5c   : > { %1495 = vmatpush1.bf16.msra.mxu1 %v1494_v50  ;;  %1468 = vmatpush1.bf16.msra.mxu0 %v1467_v51  ;;  %v1273_v50 = vld [vmem:[%s1691_s19 + $0x498] sm:$0xff] }
  0x5d   : > { %581 = vmatprep.subr.mxu1 %v1646_v30  ;;  %1233 = vmatprep.subr.msk.mxu0 %vm239_vm1, %v1231_v52  ;;  %v1277_v51 = vld [vmem:[%s1691_s19 + $0x4b8] sm:$0xff]  ;;  %v1280_v52 = vld [vmem:[%s1691_s19 + $0x4d0] sm:$0xff]  ;;  %v1518_v54 = vpack.c.bf16 %v1273_v50, %v1270_v48 }
  0x5e   : > { %v1520_v56 = vpack.c.bf16 %v1280_v52, %v1277_v51  ;;  %v1319_v48 = vld [vmem:[%s1691_s19 + $0x5d0] sm:$0xff]  ;;  %v1326_v51 = vld [vmem:[%s1691_s19 + $0x608] sm:$0xff] }
  0x5f   : > { %v1323_v50 = vld [vmem:[%s1691_s19 + $0x5f0] sm:$0xff] }
  0x60   : > { %1237 = vmatpush1.msk.msra.mxu1 %vm239_vm1, %v1232_v59  ;;  %1234 = vmatpush1.msk.msra.mxu0 %vm239_vm1, %v1230_v60  ;;  %v1279_v59 = vld [vmem:[%s1691_s19 + $0x4c8] sm:$0xff] }
  0x61   : > { %610 = vmatmul.mubr.f32.vlgmr.msra.gmra.mrb[4].mxu1 %v1771_v34  ;;  %1532 = vmatprep.subr.bf16.mxu1 %v1644_v1  ;;  %v1283_v60 = vld [vmem:[%s1691_s19 + $0x4e8] sm:$0xff] }
  0x62   : > { %533 = vmatmul.mubr.f32.vlgmr.msra.gmra.mrb[4].mxu0 %v1771_v34  ;;  %1497 = vmatprep.subr.bf16.mxu0 %v1496_v62  ;;  %v1551_v62 = vpack.c.bf16 %v1281_v57, %v1278_v55  ;;  %v1524_v3 = vpack.c.bf16 %v1286_v61, %v1283_v60  ;;  %v1571_v55 = vpack.c.bf16 %v1326_v51, %v1323_v50  ;;  %v1322_v57 = vld [vmem:[%s1691_s19 + $0x5e8] sm:$0xff]  ;;  %v1332_v60 = vld [vmem:[%s1691_s19 + $0x638] sm:$0xff] }
  0x63   : > { %1534 = vmatpush1.bf16.msra.mxu1 %v1533_v63  ;;  %1499 = vmatpush1.bf16.msra.mxu0 %v1498_v2  ;;  %v1522_v63 = vpack.c.bf16 %v1279_v59, %v1276_v58  ;;  %v1284_v2 = vld [vmem:[%s1691_s19 + $0x4f0] sm:$0xff]  ;;  %v1325_v58 = vld [vmem:[%s1691_s19 + $0x600] sm:$0xff] }
  0x64   : > { %1239 = vmatprep.mubr.msk.f32.mxu1 %vm232_vm0, %v1787_v45  ;;  %1236 = vmatprep.mubr.msk.f32.mxu0 %vm232_vm0, %v1787_v45  ;;  %v1554_v9 = vpack.c.bf16 %v1287_v4, %v1284_v2  ;;  %v1329_v59 = vld [vmem:[%s1691_s19 + $0x620] sm:$0xff]  ;;  %v1328_v4 = vld [vmem:[%s1691_s19 + $0x618] sm:$0xff] }
  0x65   : > { %615 = vmatmul.mubr.f32.gmra.mrb[6].mxu1 %v1793_v49  ;;  %1535 = vmatprep.subr.bf16.mxu1 %v1644_v1  ;;  %v1575_v2 = vpack.c.bf16 %v1332_v60, %v1329_v59 }
  0x66   : > { %539 = vmatmul.mubr.f32.gmra.mrb[6].mxu0 %v1793_v49  ;;  %1501 = vmatprep.subr.bf16.mxu0 %v1500_v11  ;;  %v1290_v11 = vld [vmem:[%s1691_s19 + $0x520] sm:$0xff] }
  0x67   : > { %1537 = vmatpush1.bf16.msra.mxu1 %v1536_v12  ;;  %1503 = vmatpush1.bf16.msra.mxu0 %v1502_v13  ;;  %v1528_v12 = vpack.c.bf16 %v1292_v8, %v1289_v7  ;;  %v1293_v13 = vld [vmem:[%s1691_s19 + $0x538] sm:$0xff]  ;;  %v1577_v8 = vpack.c.bf16 %v1331_v5, %v1328_v4 }
  0x68   : > { %1538 = vmatprep.subr.bf16.mxu1 %v1644_v1  ;;  %1505 = vmatprep.subr.bf16.mxu0 %v1504_v15  ;;  %v1291_v15 = vld [vmem:[%s1691_s19 + $0x528] sm:$0xff]  ;;  %v1557_v16 = vpack.c.bf16 %v1293_v13, %v1290_v11  ;;  %v1339_v11 = vld [vmem:[%s1691_s19 + $0x670] sm:$0xff]  ;;  %v1337_v13 = vld [vmem:[%s1691_s19 + $0x660] sm:$0xff] }
  0x69   : > { %1302 = vmatprep.mubr.msk.f32.mxu1 %vm232_vm0, %v1678_v0  ;;  %1299 = vmatprep.mubr.msk.f32.mxu0 %vm232_vm0, %v1678_v0  ;;  %v1530_v17 = vpack.c.bf16 %v1291_v15, %v1288_v14  ;;  %v1341_v14 = vld [vmem:[%s1691_s19 + $0x680] sm:$0xff]  ;;  %v1344_v15 = vld [vmem:[%s1691_s19 + $0x698] sm:$0xff] }
  0x6a   : > { %v1583_v19 = vpack.c.bf16 %v1344_v15, %v1341_v14 }
  0x6b   : > { %1540 = vmatpush1.bf16.msra.mxu1 %v1539_v21  ;;  %1507 = vmatpush1.bf16.msra.mxu0 %v1506_v22  ;;  %v1306_v21 = vld [vmem:[%s1691_s19 + $0x568] sm:$0xff]  ;;  %v1309_v22 = vld [vmem:[%s1691_s19 + $0x580] sm:$0xff] }
  0x6c   : > { %1541 = vmatprep.subr.bf16.mxu1 %v1644_v1  ;;  %1509 = vmatprep.subr.bf16.mxu0 %v1508_v25  ;;  %v1296_v25 = vld [vmem:[%s1691_s19 + $0x550] sm:$0x7]  ;;  %v1596_v28 = vpack.c.bf16 %v1309_v22, %v1306_v21  ;;  %v1340_v21 = vld [vmem:[%s1691_s19 + $0x678] sm:$0xff] }
  0x6d   : > { %v1343_v22 = vld [vmem:[%s1691_s19 + $0x690] sm:$0xff] }
  0x6f   : > { %1543 = vmatpush1.bf16.msra.mxu1 %v1542_v32  ;;  %1511 = vmatpush1.bf16.msra.mxu0 %v1510_v33  ;;  %v1314_v32 = vld [vmem:[%s1691_s19 + $0x5a8] sm:$0xff]  ;;  %v1312_v33 = vld [vmem:[%s1691_s19 + $0x598] sm:$0xff] }
  0x70   : > { %1544 = vmatprep.subr.bf16.mxu1 %v1644_v1  ;;  %1513 = vmatprep.subr.bf16.mxu0 %v1512_v36  ;;  %v1310_v36 = vld [vmem:[%s1691_s19 + $0x588] sm:$0xff]  ;;  %v1563_v40 = vpack.c.bf16 %v1314_v32, %v1311_v31  ;;  %v1599_v41 = vpack.c.bf16 %v1315_v35, %v1312_v33  ;;  %v1349_v32 = vld [vmem:[%s1691_s19 + $0x6c0] sm:$0xff]  ;;  %v1356_v35 = vld [vmem:[%s1691_s19 + $0x6f8] sm:$0xff] }
  0x71   : > { %v1346_v31 = vld [vmem:[%s1691_s19 + $0x6a8] sm:$0xff]  ;;  %v1353_v33 = vld [vmem:[%s1691_s19 + $0x6e0] sm:$0xff] }
  0x72   : > { %v1591_v39 = vpack.c.bf16 %v1356_v35, %v1353_v33 }
  0x73   : > { %1546 = vmatpush1.bf16.msra.mxu1 %v1545_v42  ;;  %1515 = vmatpush1.bf16.msra.mxu0 %v1514_v43  ;;  %v1565_v42 = vpack.c.bf16 %v1313_v37, %v1310_v36  ;;  %v1318_v43 = vld [vmem:[%s1691_s19 + $0x5c8] sm:$0xff]  ;;  %v1589_v37 = vpack.c.bf16 %v1349_v32, %v1346_v31 }
  0x74   : > { %1547 = vmatprep.subr.bf16.mxu1 %v1644_v1  ;;  %1517 = vmatprep.subr.bf16.mxu0 %v1516_v46  ;;  %v1321_v46 = vld [vmem:[%s1691_s19 + $0x5e0] sm:$0xff] }
  0x75   : > { %v1602_v52 = vpack.c.bf16 %v1321_v46, %v1318_v43  ;;  %v1359_v46 = vld [vmem:[%s1691_s19 + $0x710] sm:$0x7] }
  0x77   : > { %1549 = vmatpush1.bf16.msra.mxu1 %v1548_v53  ;;  %1519 = vmatpush1.bf16.msra.mxu0 %v1518_v54  ;;  %v1569_v53 = vpack.c.bf16 %v1319_v48, %v1316_v47  ;;  %v1324_v54 = vld [vmem:[%s1691_s19 + $0x5f8] sm:$0xff]  ;;  %v1358_v48 = vld [vmem:[%s1691_s19 + $0x708] sm:$0x7] }
  0x78   : > { %1550 = vmatprep.subr.bf16.mxu1 %v1644_v1  ;;  %1521 = vmatprep.subr.bf16.mxu0 %v1520_v56  ;;  %v1327_v56 = vld [vmem:[%s1691_s19 + $0x610] sm:$0xff]  ;;  %v1360_v47 = vld [vmem:[%s1691_s19 + $0x718] sm:$0x7] }
  0x79   : > { %v1605_v61 = vpack.c.bf16 %v1327_v56, %v1324_v54 }
  0x7b   : > { %1552 = vmatpush1.bf16.msra.mxu1 %v1551_v62  ;;  %1523 = vmatpush1.bf16.msra.mxu0 %v1522_v63  ;;  %v1573_v62 = vpack.c.bf16 %v1325_v58, %v1322_v57  ;;  %v1330_v63 = vld [vmem:[%s1691_s19 + $0x628] sm:$0xff] }
  0x7c   : > { %1553 = vmatprep.subr.bf16.mxu1 %v1644_v1  ;;  %1525 = vmatprep.subr.bf16.mxu0 %v1524_v3  ;;  %v1333_v3 = vld [vmem:[%s1691_s19 + $0x640] sm:$0xff] }
  0x7d   : > { %v1608_v7 = vpack.c.bf16 %v1333_v3, %v1330_v63 }
  0x7f   : > { %1555 = vmatpush1.bf16.msra.mxu1 %v1554_v9  ;;  %1527 = vmatpush1.bf16.msra.mxu0 %v1526_v10  ;;  %v1336_v9 = vld [vmem:[%s1691_s19 + $0x658] sm:$0xff] }
  0x80   : > { %1556 = vmatprep.subr.bf16.mxu1 %v1644_v1  ;;  %1529 = vmatprep.subr.bf16.mxu0 %v1528_v12  ;;  %v1334_v12 = vld [vmem:[%s1691_s19 + $0x648] sm:$0xff] }
  0x83   : > { %1558 = vmatpush1.bf16.msra.mxu1 %v1557_v16  ;;  %1531 = vmatpush1.bf16.msra.mxu0 %v1530_v17  ;;  %v1611_v16 = vpack.c.bf16 %v1339_v11, %v1336_v9  ;;  %v1581_v17 = vpack.c.bf16 %v1337_v13, %v1334_v12 }
  0x84   : > { %806 = vmatprep.subr.mxu1 %v1646_v30  ;;  %1297 = vmatprep.subr.msk.mxu0 %vm239_vm1, %v1295_v18  ;;  %v1342_v18 = vld [vmem:[%s1691_s19 + $0x688] sm:$0xff] }
  0x87   : > { %1301 = vmatpush1.msk.msra.mxu1 %vm239_vm1, %v1296_v25  ;;  %1298 = vmatpush1.msk.msra.mxu0 %vm239_vm1, %v1294_v26  ;;  %v1614_v25 = vpack.c.bf16 %v1345_v20, %v1342_v18  ;;  %v1585_v26 = vpack.c.bf16 %v1343_v22, %v1340_v21 }
  0x88   : > { %835 = vmatmul.mubr.f32.vlgmr.msra.gmra.mrb[8].mxu1 %v1771_v34  ;;  %1595 = vmatprep.subr.bf16.mxu1 %v1644_v1 }
  0x89   : > { %758 = vmatmul.mubr.f32.vlgmr.msra.gmra.mrb[8].mxu0 %v1771_v34  ;;  %1560 = vmatprep.subr.bf16.mxu0 %v1559_v27  ;;  %v1348_v27 = vld [vmem:[%s1691_s19 + $0x6b8] sm:$0xff] }
  0x8a   : > { %1597 = vmatpush1.bf16.msra.mxu1 %v1596_v28  ;;  %1562 = vmatpush1.bf16.msra.mxu0 %v1561_v29  ;;  %v1587_v28 = vpack.c.bf16 %v1350_v24, %v1347_v23  ;;  %v1351_v29 = vld [vmem:[%s1691_s19 + $0x6d0] sm:$0xff] }
  0x8b   : > { %1303 = vmatprep.mubr.msk.f32.mxu1 %vm232_vm0, %v1787_v45  ;;  %1300 = vmatprep.mubr.msk.f32.mxu0 %vm232_vm0, %v1787_v45  ;;  %v1617_v36 = vpack.c.bf16 %v1351_v29, %v1348_v27 }
  0x8c   : > { %840 = vmatmul.mubr.f32.gmra.mrb[10].mxu1 %v1793_v49  ;;  %1598 = vmatprep.subr.bf16.mxu1 %v1644_v1 }
  0x8d   : > { %764 = vmatmul.mubr.f32.gmra.mrb[10].mxu0 %v1793_v49  ;;  %1564 = vmatprep.subr.bf16.mxu0 %v1563_v40  ;;  %v1357_v40 = vld [vmem:[%s1691_s19 + $0x700] sm:$0xff] }
  0x8e   : > { %1600 = vmatpush1.bf16.msra.mxu1 %v1599_v41  ;;  %1566 = vmatpush1.bf16.msra.mxu0 %v1565_v42  ;;  %v1352_v41 = vld [vmem:[%s1691_s19 + $0x6d8] sm:$0xff]  ;;  %v1355_v42 = vld [vmem:[%s1691_s19 + $0x6f0] sm:$0xff]  ;;  %v1620_v43 = vpack.c.bf16 %v1357_v40, %v1354_v38 }
  0x8f   : > { %1601 = vmatprep.subr.bf16.mxu1 %v1644_v1  ;;  %1568 = vmatprep.subr.bf16.mxu0 %v1567_v44  ;;  %v1593_v44 = vpack.c.bf16 %v1355_v42, %v1352_v41 }
  0x90   : > { %1366 = vmatprep.mubr.msk.f32.mxu1 %vm232_vm0, %v1678_v0  ;;  %1363 = vmatprep.mubr.msk.f32.mxu0 %vm232_vm0, %v1678_v0  ;;  %v1338_v0 = vld [vmem:[%s1691_s19 + $0x668] sm:$0xff] }
  0x91   : > { %v1579_v10 = vpack.c.bf16 %v1338_v0, %v1335_v6 }
  0x92   : > { %1603 = vmatpush1.bf16.msra.mxu1 %v1602_v52  ;;  %1570 = vmatpush1.bf16.msra.mxu0 %v1569_v53 }
  0x93   : > { %1604 = vmatprep.subr.bf16.mxu1 %v1644_v1  ;;  %1572 = vmatprep.subr.bf16.mxu0 %v1571_v55 }
  0x96   : > { %1606 = vmatpush1.bf16.msra.mxu1 %v1605_v61  ;;  %1574 = vmatpush1.bf16.msra.mxu0 %v1573_v62 }
  0x97   : > { %1607 = vmatprep.subr.bf16.mxu1 %v1644_v1  ;;  %1576 = vmatprep.subr.bf16.mxu0 %v1575_v2 }
  0x9a   : > { %1609 = vmatpush1.bf16.msra.mxu1 %v1608_v7  ;;  %1578 = vmatpush1.bf16.msra.mxu0 %v1577_v8 }
  0x9b   : > { %1610 = vmatprep.subr.bf16.mxu1 %v1644_v1  ;;  %1580 = vmatprep.subr.bf16.mxu0 %v1579_v10 }
  0x9e   : > { %1612 = vmatpush1.bf16.msra.mxu1 %v1611_v16  ;;  %1582 = vmatpush1.bf16.msra.mxu0 %v1581_v17 }
  0x9f   : > { %1613 = vmatprep.subr.bf16.mxu1 %v1644_v1  ;;  %1584 = vmatprep.subr.bf16.mxu0 %v1583_v19 }
  0xa2   : > { %1615 = vmatpush1.bf16.msra.mxu1 %v1614_v25  ;;  %1586 = vmatpush1.bf16.msra.mxu0 %v1585_v26 }
  0xa3   : > { %1616 = vmatprep.subr.bf16.mxu1 %v1644_v1  ;;  %1588 = vmatprep.subr.bf16.mxu0 %v1587_v28 }
  0xa6   : > { %1618 = vmatpush1.bf16.msra.mxu1 %v1617_v36  ;;  %1590 = vmatpush1.bf16.msra.mxu0 %v1589_v37 }
  0xa7   : > { %1619 = vmatprep.subr.bf16.mxu1 %v1644_v1  ;;  %1592 = vmatprep.subr.bf16.mxu0 %v1591_v39 }
  0xaa   : > { %1621 = vmatpush1.bf16.msra.mxu1 %v1620_v43  ;;  %1594 = vmatpush1.bf16.msra.mxu0 %v1593_v44 }
  0xab   : > { %1031 = vmatprep.subr.mxu1 %v1646_v30  ;;  %1361 = vmatprep.subr.msk.mxu0 %vm239_vm1, %v1359_v46 }
  0xae   : > { %1365 = vmatpush1.msk.msra.mxu1 %vm239_vm1, %v1360_v47  ;;  %1362 = vmatpush1.msk.msra.mxu0 %vm239_vm1, %v1358_v48 }
  0xaf   : > { %1060 = vmatmul.mubr.f32.vlgmr.msra.gmra.mrb[12].mxu1 %v1771_v34  ;;  %983 = vmatmul.mubr.f32.vlgmr.msra.gmra.mrb[12].mxu0 %v1771_v34 }
  0xb0   : > { %1367 = vmatprep.mubr.msk.f32.mxu1 %vm232_vm0, %v1787_v45  ;;  %1364 = vmatprep.mubr.msk.f32.mxu0 %vm232_vm0, %v1787_v45 }
  0xb3   : > { %1065 = vmatmul.mubr.f32.gmra.mrb[14].mxu1 %v1793_v49  ;;  %989 = vmatmul.mubr.f32.gmra.mrb[14].mxu0 %v1793_v49 }
  0xb7   : > { %v1081_v18 = vpop.permute.xlu0 %1080 }
  0xd1   : > { %v1086_v40 = vpop.permute.xlu0 %1085 }
 0x10d   : > { %v315_v1 = vpop.f32.mrb[0].mxu0 }
 0x10e   : > { %v317_v30 = vpop.f32.mrb[1].mxu0  ;;  %v392_v50 = vpop.f32.mrb[0].mxu1 }
 0x10f   : > { %v394_v51 = vpop.f32.mrb[1].mxu1 }
 0x112   : > { %v321_v52 = vpop.f32.mrb[2].mxu0  ;;  %v397_v53 = vpop.f32.mrb[2].mxu1 }
 0x113   : > { %v323_v54 = vpop.f32.mrb[3].mxu0  ;;  %v399_v55 = vpop.f32.mrb[3].mxu1 }
 0x134   : > { %v611_v56 = vpop.f32.mrb[4].mxu1 }
 0x135   : > { %v622_v34 = vmax.f32 %v392_v50, %v611_v56  ;;  %v534_v57 = vpop.f32.mrb[4].mxu0  ;;  %v613_v58 = vpop.f32.mrb[5].mxu1 }
 0x136   : > { %v620_v59 = vmax.f32 %v315_v1, %v534_v57  ;;  %v536_v60 = vpop.f32.mrb[5].mxu0 }
 0x137   : > { %v621_v61 = vmax.f32 %v317_v30, %v536_v60 }
 0x138   : > { %v616_v45 = vpop.f32.mrb[6].mxu1 }
 0x139   : > { %v625_v62 = vmax.f32 %v397_v53, %v616_v45  ;;  %v540_v63 = vpop.f32.mrb[6].mxu0  ;;  %v618_v2 = vpop.f32.mrb[7].mxu1 }
 0x13a   : > { %v623_v49 = vmax.f32 %v321_v52, %v540_v63  ;;  %v542_v3 = vpop.f32.mrb[7].mxu0 }
 0x13b   : > { %v624_v4 = vmax.f32 %v323_v54, %v542_v3 }
 0x15b   : > { %v836_v5 = vpop.f32.mrb[8].mxu1 }
 0x15c   : > { %v847_v6 = vmax.f32 %v622_v34, %v836_v5  ;;  %v759_v0 = vpop.f32.mrb[8].mxu0  ;;  %v838_v7 = vpop.f32.mrb[9].mxu1 }
 0x15d   : > { %v845_v8 = vmax.f32 %v620_v59, %v759_v0  ;;  %v761_v9 = vpop.f32.mrb[9].mxu0 }
 0x15e   : > { %v846_v10 = vmax.f32 %v621_v61, %v761_v9 }
 0x15f   : > { %v841_v11 = vpop.f32.mrb[10].mxu1 }
 0x160   : > { %v850_v12 = vmax.f32 %v625_v62, %v841_v11  ;;  %v765_v13 = vpop.f32.mrb[10].mxu0  ;;  %v843_v14 = vpop.f32.mrb[11].mxu1 }
 0x161   : > { %v848_v15 = vmax.f32 %v623_v49, %v765_v13  ;;  %v767_v16 = vpop.f32.mrb[11].mxu0 }
 0x162   : > { %v849_v17 = vmax.f32 %v624_v4, %v767_v16 }
 0x182   : > { %v1061_v19 = vpop.f32.mrb[12].mxu1  ;;  %v984_v20 = vpop.f32.mrb[12].mxu0 }
 0x183   : > { %v1072_v21 = vmax.f32 %v847_v6, %v1061_v19  ;;  %v1070_v22 = vmax.f32 %v845_v8, %v984_v20  ;;  %v986_v23 = vpop.f32.mrb[13].mxu0  ;;  %v1063_v24 = vpop.f32.mrb[13].mxu1 }
 0x184   : > { %v1071_v25 = vmax.f32 %v846_v10, %v986_v23 }
 0x185   : > { %v1090_v26 = vadd.f32 %v1081_v18, %v1072_v21  ;;  %v1088_v27 = vadd.f32 %v1081_v18, %v1070_v22 }
 0x186   : > { %v1089_v28 = vadd.f32 %v1081_v18, %v1071_v25  ;;  %v1066_v29 = vpop.f32.mrb[14].mxu1  ;;  %v990_v31 = vpop.f32.mrb[14].mxu0 }
 0x187   : > { %v1096_v32 = vmax.f32 %v1090_v26, 0.0  ;;  %v1094_v33 = vmax.f32 %v1088_v27, 0.0  ;;  %v1075_v35 = vmax.f32 %v850_v12, %v1066_v29  ;;  %v1073_v36 = vmax.f32 %v848_v15, %v990_v31  ;;  %v992_v37 = vpop.f32.mrb[15].mxu0  ;;  %v1068_v38 = vpop.f32.mrb[15].mxu1 }
 0x188   : > { %v1095_v39 = vmax.f32 %v1089_v28, 0.0  ;;  %v1074_v41 = vmax.f32 %v849_v17, %v992_v37 }
 0x189   : > { %1103 = vst.msk [vmem:[%s170_s6 + $0x10] sm:$0xff] %vm1102_vm2, %v1096_v32  ;;  %1100 = vst [vmem:[%s170_s6] sm:$0xff] %v1094_v33  ;;  %v1093_v42 = vadd.f32 %v1086_v40, %v1075_v35  ;;  %v1091_v43 = vadd.f32 %v1086_v40, %v1073_v36 }
 0x18a   : > { %1101 = vst [vmem:[%s170_s6 + $0x8] sm:$0xff] %v1095_v39  ;;  %v1092_v44 = vadd.f32 %v1086_v40, %v1074_v41 }
 0x18b   : > { %v1099_v46 = vmax.f32 %v1093_v42, 0.0  ;;  %v1097_v47 = vmax.f32 %v1091_v43, 0.0 }
 0x18c   : > { %v1098_v48 = vmax.f32 %v1092_v44, 0.0 }
 0x18d   : > { %1106 = vst.msk [vmem:[%s170_s6 + $0x28] sm:$0xff] %vm1102_vm2, %v1099_v46  ;;  %1104 = vst [vmem:[%s170_s6 + $0x18] sm:$0xff] %v1097_v47 }
 0x18e   : > { %1105 = vst [vmem:[%s170_s6 + $0x20] sm:$0xff] %v1098_v48 }
 0x18f PF: > { %s13_s12 = sadd.s32 1, %s1642_s12  }
 0x190   : > { %p10_p4 = scmp.ge.s32.totalorder %s13_s12, 4  }
 0x192   :  { %12 = sbr.rel (!%p10_p4) target bundleno = 1 (0x1), region = 65 }

// kernel: cnn2_forward.3
= control target key start
LH: loop header
LB: loop body
LE: loop exit
PB: predicated region body
PF: predicated region fallthrough
CT: control target
= control target key end

     0   :  { %s3290_s23 = smov 0   ;;  %s3883_s0 = inlined_call_operand.vmem [shape: f32[2,4,784,64], index: 0, kind: input, shape index: {}]   ;;  %s3884_s1 = inlined_call_operand.vmem [shape: f32[16,784], index: 1, kind: input, shape index: {}]   ;;  %s3885_s2 = inlined_call_operand.vmem [shape: f32[16,1], index: 2, kind: input, shape index: {}]   ;;  %s3886_s3 = inlined_call_operand.vmem [shape: f32[16,64], index: 3, kind: input, shape index: {}]   ;;  %s3887_s4 = inlined_call_operand.<no memory space> [shape: f32[1,1], index: 4, kind: input, shape index: {}]   ;;  %s3888_s5 = inlined_call_operand.vmem [shape: f32[2,16,64], index: 5, kind: output, shape index: {0}]   ;;  %s3889_s6 = inlined_call_operand.vmem [shape: f32[2,1,1], index: 6, kind: output, shape index: {1}]  }
   0x1   :  { %v12_v0 = vstv %s3887_s4 }
   0x2   :  { %13 = vst [vmem:[#allocation2] sm:$0x1] %v12_v0 }
   0x3 LB: > { %s2005_s24 = sadd.s32 4294967295, %s3249_s23   ;;  %p2009_p0 = scmp.ge.s32.totalorder %s3249_s23, 1  ;;  %s3249_s23 = sphi %s3290_s23, %s19_s23  }
   0x4   : > { %p217_p1 = scmp.lt.s32.totalorder %s3249_s23, 3 }
   0x6   : > { %p218_p2 = pnand %p2009_p0, %p217_p1 }
   0x7   : > { %p250_p3 = scmp.lt.s32.totalorder (!%p218_p2), %s2005_s24, 1  ;;  %v3301_v1 = vld [vmem:[%s3884_s1 + $0x8] sm:$0xff] (!%p218_p2)  ;;  %v3306_v2 = vld [vmem:[%s3884_s1 + $0x18] sm:$0xff] (!%p218_p2)  ;;  %vm375_vm0 = vcmask (!%p218_p2), 130048   ;;  %vm1901_vm1 = vcmask (!%p218_p2), 523264   ;;  %vm1923_vm2 = vcmask (!%p218_p2), 0  }
   0x8   : > { %221 = sbr.rel (%p218_p2) target bundleno = 623 (0x26f), region = 40  ;;  %446 = vmatprep.mubr.f32.mxu0 (!%p218_p2), %v3301_v1  ;;  %521 = vmatprep.mubr.f32.mxu1 (!%p218_p2), %v3306_v2 }
   0xf   : > { %s3891_s24 = smov (!%p250_p3, %s2005_s24), 1 }
  0x10   : > { %s3218_s28 = smul.u32 3136, %s3891_s24  ;;  %s2317_s19 = sshll.u32 %s3891_s24, 4 }
  0x11   : > { %s259_s22 = scalar_lea.vmem %s3888_s5, %s2317_s19  ;;  %s262_s30 = scalar_lea.vmem %s3889_s6, %s3891_s24 }
  0x12   : > { %s3316_s7 = scalar_lea.vmem %s3883_s0, %s3218_s28 }
  0x13   : > { %v293_v3 = vld [vmem:[%s3316_s7 + $0x80] sm:$0xff]  ;;  %v294_v4 = vld [vmem:[%s3316_s7 + $0x88] sm:$0xff]  ;;  %v295_v14 = vld [vmem:[%s3316_s7 + $0x90] sm:$0xff] }
  0x14   : > { %v325_v5 = vld [vmem:[%s3316_s7 + $0x180] sm:$0xff]  ;;  %v2818_v6 = vpack.c.bf16 %v294_v4, %v293_v3  ;;  %v326_v7 = vld [vmem:[%s3316_s7 + $0x188] sm:$0xff]  ;;  %v296_v16 = vld [vmem:[%s3316_s7 + $0x98] sm:$0xff] }
  0x15   : > { %v277_v8 = vld [vmem:[%s3316_s7] sm:$0xff]  ;;  %v278_v9 = vld [vmem:[%s3316_s7 + $0x8] sm:$0xff]  ;;  %v2850_v10 = vpack.c.bf16 %v326_v7, %v325_v5  ;;  %v327_v17 = vld [vmem:[%s3316_s7 + $0x190] sm:$0xff]  ;;  %v2822_v19 = vpack.c.bf16 %v296_v16, %v295_v14 }
  0x16   : > { %v2820_v11 = vpack.c.bf16 %v278_v9, %v277_v8  ;;  %v309_v12 = vld [vmem:[%s3316_s7 + $0x100] sm:$0xff]  ;;  %v310_v13 = vld [vmem:[%s3316_s7 + $0x108] sm:$0xff]  ;;  %2819 = vmatprep.subr.bf16.mxu0 %v2818_v6  ;;  %v328_v18 = vld [vmem:[%s3316_s7 + $0x198] sm:$0xff] }
  0x17   : > { %v2852_v15 = vpack.c.bf16 %v310_v13, %v309_v12  ;;  %2851 = vmatprep.subr.bf16.mxu1 %v2850_v10  ;;  %v2854_v20 = vpack.c.bf16 %v328_v18, %v327_v17  ;;  %v279_v21 = vld [vmem:[%s3316_s7 + $0x10] sm:$0xff]  ;;  %v280_v22 = vld [vmem:[%s3316_s7 + $0x18] sm:$0xff]  ;;  %v297_v26 = vld [vmem:[%s3316_s7 + $0xa0] sm:$0xff] }
  0x18   : > { %2821 = vmatpush3.bf16.msra.mxu0 %v2820_v11  ;;  %v311_v23 = vld [vmem:[%s3316_s7 + $0x110] sm:$0xff]  ;;  %v2824_v24 = vpack.c.bf16 %v280_v22, %v279_v21  ;;  %v312_v25 = vld [vmem:[%s3316_s7 + $0x118] sm:$0xff]  ;;  %v298_v27 = vld [vmem:[%s3316_s7 + $0xa8] sm:$0xff] }
  0x19   : > { %2853 = vmatpush3.bf16.msra.mxu1 %v2852_v15  ;;  %2823 = vmatprep.subr.bf16.mxu0 %v2822_v19  ;;  %v2856_v28 = vpack.c.bf16 %v312_v25, %v311_v23  ;;  %v2826_v29 = vpack.c.bf16 %v298_v27, %v297_v26  ;;  %v329_v30 = vld [vmem:[%s3316_s7 + $0x1a0] sm:$0xff]  ;;  %v330_v31 = vld [vmem:[%s3316_s7 + $0x1a8] sm:$0xff]  ;;  %v299_v38 = vld [vmem:[%s3316_s7 + $0xb0] sm:$0xff] }
  0x1a   : > { %2855 = vmatprep.subr.bf16.mxu1 %v2854_v20  ;;  %v281_v32 = vld [vmem:[%s3316_s7 + $0x20] sm:$0xff]  ;;  %v2858_v33 = vpack.c.bf16 %v330_v31, %v329_v30  ;;  %v282_v34 = vld [vmem:[%s3316_s7 + $0x28] sm:$0xff]  ;;  %v300_v39 = vld [vmem:[%s3316_s7 + $0xb8] sm:$0xff] }
  0x1b   : > { %v313_v35 = vld [vmem:[%s3316_s7 + $0x120] sm:$0xff]  ;;  %v314_v36 = vld [vmem:[%s3316_s7 + $0x128] sm:$0xff]  ;;  %v2828_v37 = vpack.c.bf16 %v282_v34, %v281_v32  ;;  %v331_v40 = vld [vmem:[%s3316_s7 + $0x1b0] sm:$0xff]  ;;  %v2830_v42 = vpack.c.bf16 %v300_v39, %v299_v38 }
  0x1c   : > { %2825 = vmatpush3.bf16.msra.mxu0 %v2824_v24  ;;  %v2860_v41 = vpack.c.bf16 %v314_v36, %v313_v35  ;;  %v332_v43 = vld [vmem:[%s3316_s7 + $0x1b8] sm:$0xff]  ;;  %v283_v44 = vld [vmem:[%s3316_s7 + $0x30] sm:$0xff]  ;;  %v301_v49 = vld [vmem:[%s3316_s7 + $0xc0] sm:$0xff] }
  0x1d   : > { %2857 = vmatpush3.bf16.msra.mxu1 %v2856_v28  ;;  %2827 = vmatprep.subr.bf16.mxu0 %v2826_v29  ;;  %v284_v45 = vld [vmem:[%s3316_s7 + $0x38] sm:$0xff]  ;;  %v2862_v46 = vpack.c.bf16 %v332_v43, %v331_v40  ;;  %v315_v47 = vld [vmem:[%s3316_s7 + $0x130] sm:$0xff]  ;;  %v302_v50 = vld [vmem:[%s3316_s7 + $0xc8] sm:$0xff] }
  0x1e   : > { %2859 = vmatprep.subr.bf16.mxu1 %v2858_v33  ;;  %v316_v48 = vld [vmem:[%s3316_s7 + $0x138] sm:$0xff]  ;;  %v333_v51 = vld [vmem:[%s3316_s7 + $0x1c0] sm:$0xff]  ;;  %v334_v52 = vld [vmem:[%s3316_s7 + $0x1c8] sm:$0xff]  ;;  %v2832_v53 = vpack.c.bf16 %v284_v45, %v283_v44  ;;  %v2834_v55 = vpack.c.bf16 %v302_v50, %v301_v49 }
  0x1f   : > { %v2864_v54 = vpack.c.bf16 %v316_v48, %v315_v47  ;;  %v285_v56 = vld [vmem:[%s3316_s7 + $0x40] sm:$0xff]  ;;  %v286_v57 = vld [vmem:[%s3316_s7 + $0x48] sm:$0xff]  ;;  %v2866_v59 = vpack.c.bf16 %v334_v52, %v333_v51  ;;  %v303_v61 = vld [vmem:[%s3316_s7 + $0xd0] sm:$0xff] }
  0x20   : > { %2829 = vmatpush3.bf16.msra.mxu0 %v2828_v37  ;;  %v317_v58 = vld [vmem:[%s3316_s7 + $0x140] sm:$0xff]  ;;  %v318_v60 = vld [vmem:[%s3316_s7 + $0x148] sm:$0xff]  ;;  %v304_v62 = vld [vmem:[%s3316_s7 + $0xd8] sm:$0xff]  ;;  %v2836_v3 = vpack.c.bf16 %v286_v57, %v285_v56 }
  0x21   : > { %2861 = vmatpush3.bf16.msra.mxu1 %v2860_v41  ;;  %2831 = vmatprep.subr.bf16.mxu0 %v2830_v42  ;;  %v335_v63 = vld [vmem:[%s3316_s7 + $0x1d0] sm:$0xff]  ;;  %v336_v0 = vld [vmem:[%s3316_s7 + $0x1d8] sm:$0xff]  ;;  %v2868_v4 = vpack.c.bf16 %v318_v60, %v317_v58  ;;  %v2838_v5 = vpack.c.bf16 %v304_v62, %v303_v61  ;;  %v305_v11 = vld [vmem:[%s3316_s7 + $0xe0] sm:$0xff] }
  0x22   : > { %2863 = vmatprep.subr.bf16.mxu1 %v2862_v46  ;;  %v287_v6 = vld [vmem:[%s3316_s7 + $0x50] sm:$0xff]  ;;  %v288_v7 = vld [vmem:[%s3316_s7 + $0x58] sm:$0xff]  ;;  %v2870_v9 = vpack.c.bf16 %v336_v0, %v335_v63  ;;  %v306_v12 = vld [vmem:[%s3316_s7 + $0xe8] sm:$0xff] }
  0x23   : > { %v319_v8 = vld [vmem:[%s3316_s7 + $0x150] sm:$0xff]  ;;  %v320_v10 = vld [vmem:[%s3316_s7 + $0x158] sm:$0xff]  ;;  %v337_v13 = vld [vmem:[%s3316_s7 + $0x1e0] sm:$0xff]  ;;  %v2840_v15 = vpack.c.bf16 %v288_v7, %v287_v6  ;;  %v2842_v17 = vpack.c.bf16 %v306_v12, %v305_v11 }
  0x24   : > { %2833 = vmatpush3.bf16.msra.mxu0 %v2832_v53  ;;  %v338_v14 = vld [vmem:[%s3316_s7 + $0x1e8] sm:$0xff]  ;;  %v2872_v16 = vpack.c.bf16 %v320_v10, %v319_v8  ;;  %v289_v18 = vld [vmem:[%s3316_s7 + $0x60] sm:$0xff]  ;;  %v307_v23 = vld [vmem:[%s3316_s7 + $0xf0] sm:$0xff] }
  0x25   : > { %2865 = vmatpush3.bf16.msra.mxu1 %v2864_v54  ;;  %2835 = vmatprep.subr.bf16.mxu0 %v2834_v55  ;;  %v290_v19 = vld [vmem:[%s3316_s7 + $0x68] sm:$0xff]  ;;  %v321_v20 = vld [vmem:[%s3316_s7 + $0x160] sm:$0xff]  ;;  %v2874_v21 = vpack.c.bf16 %v338_v14, %v337_v13  ;;  %v308_v24 = vld [vmem:[%s3316_s7 + $0xf8] sm:$0xff] }
  0x26   : > { %2867 = vmatprep.subr.bf16.mxu1 %v2866_v59  ;;  %v322_v22 = vld [vmem:[%s3316_s7 + $0x168] sm:$0xff]  ;;  %v339_v25 = vld [vmem:[%s3316_s7 + $0x1f0] sm:$0xff]  ;;  %v340_v26 = vld [vmem:[%s3316_s7 + $0x1f8] sm:$0xff]  ;;  %v2844_v27 = vpack.c.bf16 %v290_v19, %v289_v18  ;;  %v2846_v29 = vpack.c.bf16 %v308_v24, %v307_v23 }
  0x27   : > { %v2876_v28 = vpack.c.bf16 %v322_v22, %v321_v20  ;;  %v291_v30 = vld [vmem:[%s3316_s7 + $0x70] sm:$0xff]  ;;  %v292_v31 = vld [vmem:[%s3316_s7 + $0x78] sm:$0xff]  ;;  %v2878_v33 = vpack.c.bf16 %v340_v26, %v339_v25  ;;  %v357_v35 = vld [vmem:[%s3316_s7 + $0x280] sm:$0xff] }
  0x28   : > { %2837 = vmatpush3.bf16.msra.mxu0 %v2836_v3  ;;  %v323_v32 = vld [vmem:[%s3316_s7 + $0x170] sm:$0xff]  ;;  %v324_v34 = vld [vmem:[%s3316_s7 + $0x178] sm:$0xff]  ;;  %v358_v36 = vld [vmem:[%s3316_s7 + $0x288] sm:$0xff]  ;;  %v2848_v39 = vpack.c.bf16 %v292_v31, %v291_v30 }
  0x29   : > { %2869 = vmatpush3.bf16.msra.mxu1 %v2868_v4  ;;  %2839 = vmatprep.subr.bf16.mxu0 %v2838_v5  ;;  %v373_v37 = vld [vmem:[%s3316_s7 + $0x300] sm:$0xff]  ;;  %v374_v38 = vld [vmem:[%s3316_s7 + $0x308] sm:$0xff]  ;;  %v2880_v40 = vpack.c.bf16 %v324_v34, %v323_v32  ;;  %v2882_v41 = vpack.c.bf16 %v358_v36, %v357_v35  ;;  %v359_v45 = vld [vmem:[%s3316_s7 + $0x290] sm:$0xff] }
  0x2a   : > { %2871 = vmatprep.subr.bf16.mxu1 %v2870_v9  ;;  %v341_v42 = vld [vmem:[%s3316_s7 + $0x200] sm:$0xff]  ;;  %v342_v43 = vld [vmem:[%s3316_s7 + $0x208] sm:$0xff]  ;;  %v2914_v44 = vpack.c.bf16 %v374_v38, %v373_v37  ;;  %v360_v46 = vld [vmem:[%s3316_s7 + $0x298] sm:$0xff] }
  0x2b   : > { %v3393_v47 = vld [vmem:[%s3884_s1] sm:$0xff]  ;;  %v2884_v48 = vpack.c.bf16 %v342_v43, %v341_v42  ;;  %v2031_v49 = vld [vmem:[%s3316_s7 + $0x390] sm:$0xff]  ;;  %v2032_v50 = vld [vmem:[%s3316_s7 + $0x398] sm:$0xff]  ;;  %v2886_v55 = vpack.c.bf16 %v360_v46, %v359_v45 }
  0x2c   : > { %2841 = vmatpush3.bf16.msra.mxu0 %v2840_v15  ;;  %v3400_v51 = vld [vmem:[%s3884_s1 + $0x10] sm:$0xff]  ;;  %v344_v53 = vld [vmem:[%s3316_s7 + $0x218] sm:$0xff]  ;;  %v3407_v54 = vld [vmem:[%s3884_s1 + $0x40] sm:$0xff]  ;;  %v2918_v59 = vpack.c.bf16 %v2032_v50, %v2031_v49 }
  0x2d   : > { %2873 = vmatpush3.bf16.msra.mxu1 %v2872_v16  ;;  %2843 = vmatprep.subr.bf16.mxu0 %v2842_v17  ;;  %v343_v52 = vld [vmem:[%s3316_s7 + $0x210] sm:$0xff]  ;;  %v361_v56 = vld [vmem:[%s3316_s7 + $0x2a0] sm:$0xff]  ;;  %v362_v57 = vld [vmem:[%s3316_s7 + $0x2a8] sm:$0xff] }
  0x2e   : > { %2875 = vmatprep.subr.bf16.mxu1 %v2874_v21  ;;  %v3415_v58 = vld [vmem:[%s3884_s1 + $0x50] sm:$0xff]  ;;  %v3421_v60 = vld [vmem:[%s3884_s1 + $0x38] sm:$0xff]  ;;  %v3426_v61 = vld [vmem:[%s3884_s1 + $0x48] sm:$0xff]  ;;  %v2888_v62 = vpack.c.bf16 %v344_v53, %v343_v52  ;;  %v2890_v0 = vpack.c.bf16 %v362_v57, %v361_v56 }
  0x2f   : > { %v3431_v63 = vld [vmem:[%s3884_s1 + $0x30] sm:$0xff]  ;;  %v345_v4 = vld [vmem:[%s3316_s7 + $0x220] sm:$0xff]  ;;  %v346_v5 = vld [vmem:[%s3316_s7 + $0x228] sm:$0xff] }
  0x30   : > { %2845 = vmatpush3.bf16.msra.mxu0 %v2844_v27  ;;  %v2015_v3 = vld [vmem:[%s3316_s7 + $0x310] sm:$0xff]  ;;  %v2016_v6 = vld [vmem:[%s3316_s7 + $0x318] sm:$0xff]  ;;  %v2033_v9 = vld [vmem:[%s3316_s7 + $0x3a0] sm:$0xff]  ;;  %v2892_v13 = vpack.c.bf16 %v346_v5, %v345_v4 }
  0x31   : > { %2877 = vmatpush3.bf16.msra.mxu1 %v2876_v28  ;;  %2847 = vmatprep.subr.bf16.mxu0 %v2846_v29  ;;  %v363_v7 = vld [vmem:[%s3316_s7 + $0x2b0] sm:$0xff]  ;;  %v364_v8 = vld [vmem:[%s3316_s7 + $0x2b8] sm:$0xff]  ;;  %v2034_v10 = vld [vmem:[%s3316_s7 + $0x3a8] sm:$0xff]  ;;  %v2920_v14 = vpack.c.bf16 %v2016_v6, %v2015_v3 }
  0x32   : > { %2879 = vmatprep.subr.bf16.mxu1 %v2878_v33  ;;  %v3447_v11 = vld [vmem:[%s3884_s1 + $0x28] sm:$0xff]  ;;  %v2894_v15 = vpack.c.bf16 %v364_v8, %v363_v7  ;;  %v2017_v16 = vld [vmem:[%s3316_s7 + $0x320] sm:$0xff]  ;;  %v347_v17 = vld [vmem:[%s3316_s7 + $0x230] sm:$0xff]  ;;  %v2922_v19 = vpack.c.bf16 %v2034_v10, %v2033_v9 }
  0x33   : > { %v3453_v12 = vld [vmem:[%s3884_s1 + $0x68] sm:$0xff]  ;;  %v348_v18 = vld [vmem:[%s3316_s7 + $0x238] sm:$0xff]  ;;  %v365_v21 = vld [vmem:[%s3316_s7 + $0x2c0] sm:$0xff] }
  0x34   : > { %2849 = vmatpush3.bf16.msra.mxu0 %v2848_v39  ;;  %v2018_v20 = vld [vmem:[%s3316_s7 + $0x328] sm:$0xff]  ;;  %v2035_v23 = vld [vmem:[%s3316_s7 + $0x3b0] sm:$0xff]  ;;  %v2036_v24 = vld [vmem:[%s3316_s7 + $0x3b8] sm:$0xff]  ;;  %v2896_v25 = vpack.c.bf16 %v348_v18, %v347_v17 }
  0x35   : > { %2881 = vmatpush3.bf16.msra.mxu1 %v2880_v40  ;;  %2883 = vmatprep.subr.bf16.mxu0 %v2882_v41  ;;  %v366_v22 = vld [vmem:[%s3316_s7 + $0x2c8] sm:$0xff]  ;;  %v2924_v26 = vpack.c.bf16 %v2018_v20, %v2017_v16  ;;  %v2019_v28 = vld [vmem:[%s3316_s7 + $0x330] sm:$0xff]  ;;  %v349_v29 = vld [vmem:[%s3316_s7 + $0x240] sm:$0xff]  ;;  %v2926_v31 = vpack.c.bf16 %v2036_v24, %v2035_v23 }
  0x36   : > { %2915 = vmatprep.subr.bf16.mxu1 %v2914_v44  ;;  %v2898_v27 = vpack.c.bf16 %v366_v22, %v365_v21  ;;  %v350_v30 = vld [vmem:[%s3316_s7 + $0x248] sm:$0xff]  ;;  %v2020_v32 = vld [vmem:[%s3316_s7 + $0x338] sm:$0xff]  ;;  %v367_v33 = vld [vmem:[%s3316_s7 + $0x2d0] sm:$0xff] }
  0x37   : > { %447 = vmatmul.mubr.f32.vlgmr.msra.gmra.mrb[0].mxu0 %v3393_v47  ;;  %v368_v34 = vld [vmem:[%s3316_s7 + $0x2d8] sm:$0xff]  ;;  %v2037_v35 = vld [vmem:[%s3316_s7 + $0x3c0] sm:$0xff]  ;;  %v2038_v36 = vld [vmem:[%s3316_s7 + $0x3c8] sm:$0xff]  ;;  %v2900_v37 = vpack.c.bf16 %v350_v30, %v349_v29  ;;  %v2928_v38 = vpack.c.bf16 %v2020_v32, %v2019_v28 }
  0x38   : > { %522 = vmatmul.mubr.f32.vlgmr.msra.gmra.mrb[0].mxu1 %v3400_v51  ;;  %2885 = vmatpush3.bf16.msra.mxu0 %v2884_v48  ;;  %v2902_v39 = vpack.c.bf16 %v368_v34, %v367_v33  ;;  %v2021_v40 = vld [vmem:[%s3316_s7 + $0x340] sm:$0xff]  ;;  %v351_v41 = vld [vmem:[%s3316_s7 + $0x250] sm:$0xff]  ;;  %v352_v42 = vld [vmem:[%s3316_s7 + $0x258] sm:$0xff]  ;;  %v2930_v43 = vpack.c.bf16 %v2038_v36, %v2037_v35 }
  0x39   : > { %2917 = vmatpush3.bf16.msra.mxu1 %v2914_v44  ;;  %451 = vmatprep.mubr.f32.mxu0 %v3407_v54  ;;  %v2022_v44 = vld [vmem:[%s3316_s7 + $0x348] sm:$0xff]  ;;  %v369_v45 = vld [vmem:[%s3316_s7 + $0x2e0] sm:$0xff]  ;;  %v2039_v48 = vld [vmem:[%s3316_s7 + $0x3d0] sm:$0xff]  ;;  %v2904_v50 = vpack.c.bf16 %v352_v42, %v351_v41 }
  0x3a   : > { %526 = vmatprep.mubr.f32.mxu1 %v3415_v58  ;;  %2887 = vmatprep.subr.bf16.mxu0 %v2886_v55  ;;  %v370_v46 = vld [vmem:[%s3316_s7 + $0x2e8] sm:$0xff]  ;;  %v2040_v49 = vld [vmem:[%s3316_s7 + $0x3d8] sm:$0xff]  ;;  %v2932_v52 = vpack.c.bf16 %v2022_v44, %v2021_v40  ;;  %v2023_v55 = vld [vmem:[%s3316_s7 + $0x350] sm:$0xff] }
  0x3b   : > { %452 = vmatmul.mubr.f32.gmra.mrb[2].mxu0 %v3421_v60  ;;  %2919 = vmatprep.subr.bf16.mxu1 %v2918_v59  ;;  %v2906_v53 = vpack.c.bf16 %v370_v46, %v369_v45  ;;  %v353_v56 = vld [vmem:[%s3316_s7 + $0x260] sm:$0xff]  ;;  %v354_v57 = vld [vmem:[%s3316_s7 + $0x268] sm:$0xff]  ;;  %v2934_v59 = vpack.c.bf16 %v2040_v49, %v2039_v48  ;;  %v372_v3 = vld [vmem:[%s3316_s7 + $0x2f8] sm:$0xff] }
  0x3c   : > { %527 = vmatmul.mubr.f32.gmra.mrb[2].mxu1 %v3426_v61  ;;  %2889 = vmatpush3.bf16.msra.mxu0 %v2888_v62  ;;  %v2024_v62 = vld [vmem:[%s3316_s7 + $0x358] sm:$0xff]  ;;  %v2041_v4 = vld [vmem:[%s3316_s7 + $0x3e0] sm:$0xff]  ;;  %v2042_v5 = vld [vmem:[%s3316_s7 + $0x3e8] sm:$0xff]  ;;  %v2908_v6 = vpack.c.bf16 %v354_v57, %v353_v56 }
  0x3d   : > { %2794 = vmatprep.mubr.msk.f32.mxu1 %vm375_vm0, %v3431_v63  ;;  %2891 = vmatprep.subr.bf16.mxu0 %v2890_v0  ;;  %v371_v0 = vld [vmem:[%s3316_s7 + $0x2f0] sm:$0xff]  ;;  %v2936_v7 = vpack.c.bf16 %v2024_v62, %v2023_v55  ;;  %v2025_v9 = vld [vmem:[%s3316_s7 + $0x360] sm:$0xff]  ;;  %v2064_v17 = vld [vmem:[%s3316_s7 + $0x498] sm:$0xff] }
  0x3e   : > { %596 = vmatprep.mubr.f32.mxu0 %v3447_v11  ;;  %v2910_v8 = vpack.c.bf16 %v372_v3, %v371_v0  ;;  %v355_v10 = vld [vmem:[%s3316_s7 + $0x270] sm:$0xff]  ;;  %v2065_v28 = vld [vmem:[%s3316_s7 + $0x4a0] sm:$0xff]  ;;  %v2066_v29 = vld [vmem:[%s3316_s7 + $0x4a8] sm:$0xff] }
  0x3f   : > { %v2063_v16 = vld [vmem:[%s3316_s7 + $0x490] sm:$0xff]  ;;  %v2045_v30 = vld [vmem:[%s3316_s7 + $0x400] sm:$0xff]  ;;  %v2030_v41 = vld [vmem:[%s3316_s7 + $0x388] sm:$0xff] }
  0x40   : > { %2795 = vmatmul.mubr.msk.f32.vlgmr.msra.gmra.mrb[4].mxu1 %vm375_vm0, %v3453_v12  ;;  %2893 = vmatpush3.bf16.msra.mxu0 %v2892_v13  ;;  %v356_v13 = vld [vmem:[%s3316_s7 + $0x278] sm:$0xff]  ;;  %v2043_v18 = vld [vmem:[%s3316_s7 + $0x3f0] sm:$0xff]  ;;  %v2950_v23 = vpack.c.bf16 %v2064_v17, %v2063_v16  ;;  %v3512_v32 = vld [vmem:[%s3884_s1 + $0x20] sm:$0xff] }
  0x41   : > { %2921 = vmatpush3.bf16.msra.mxu1 %v2920_v14  ;;  %2895 = vmatprep.subr.bf16.mxu0 %v2894_v15  ;;  %v2938_v14 = vpack.c.bf16 %v2042_v5, %v2041_v4  ;;  %v2026_v15 = vld [vmem:[%s3316_s7 + $0x368] sm:$0xff]  ;;  %v2912_v20 = vpack.c.bf16 %v356_v13, %v355_v10  ;;  %v2027_v22 = vld [vmem:[%s3316_s7 + $0x370] sm:$0xff]  ;;  %v3517_v34 = vld [vmem:[%s3884_s1 + $0x60] sm:$0xff] }
  0x42   : > { %2923 = vmatprep.subr.bf16.mxu1 %v2922_v19  ;;  %845 = vmatprep.mubr.f32.mxu1 %v3301_v1  ;;  %v2044_v19 = vld [vmem:[%s3316_s7 + $0x3f8] sm:$0xff]  ;;  %v2940_v21 = vpack.c.bf16 %v2026_v15, %v2025_v9  ;;  %v2047_v24 = vld [vmem:[%s3316_s7 + $0x410] sm:$0xff]  ;;  %v2029_v36 = vld [vmem:[%s3316_s7 + $0x380] sm:$0xff] }
  0x43   : > { %v2067_v42 = vld [vmem:[%s3316_s7 + $0x4b0] sm:$0xff]  ;;  %v2096_v45 = vld [vmem:[%s3316_s7 + $0x598] sm:$0xff]  ;;  %v2948_v49 = vpack.c.bf16 %v2030_v41, %v2029_v36  ;;  %v2070_v62 = vld [vmem:[%s3316_s7 + $0x4c8] sm:$0xff] }
  0x44   : > { %2897 = vmatpush3.bf16.msra.mxu0 %v2896_v25  ;;  %v2048_v25 = vld [vmem:[%s3316_s7 + $0x418] sm:$0xff]  ;;  %v2095_v44 = vld [vmem:[%s3316_s7 + $0x590] sm:$0xff]  ;;  %v2097_v0 = vld [vmem:[%s3316_s7 + $0x5a0] sm:$0xff] }
  0x45   : > { %2925 = vmatpush3.bf16.msra.mxu1 %v2924_v26  ;;  %2899 = vmatprep.subr.bf16.mxu0 %v2898_v27  ;;  %v2942_v26 = vpack.c.bf16 %v2044_v19, %v2043_v18  ;;  %v2028_v27 = vld [vmem:[%s3316_s7 + $0x378] sm:$0xff]  ;;  %v2952_v33 = vpack.c.bf16 %v2048_v25, %v2047_v24  ;;  %v2982_v56 = vpack.c.bf16 %v2096_v45, %v2095_v44  ;;  %v2098_v3 = vld [vmem:[%s3316_s7 + $0x5a8] sm:$0xff]  ;;  %v2099_v16 = vld [vmem:[%s3316_s7 + $0x5b0] sm:$0xff] }
  0x46   : > { %2927 = vmatprep.subr.bf16.mxu1 %v2926_v31  ;;  %v2046_v31 = vld [vmem:[%s3316_s7 + $0x408] sm:$0xff]  ;;  %v2944_v35 = vpack.c.bf16 %v2028_v27, %v2027_v22  ;;  %v3532_v46 = vld [vmem:[%s3884_s1 + $0x58] sm:$0xff]  ;;  %v2986_v10 = vpack.c.bf16 %v2098_v3, %v2097_v0  ;;  %v2055_v22 = vld [vmem:[%s3316_s7 + $0x450] sm:$0xff] }
  0x47   : > { %v2946_v40 = vpack.c.bf16 %v2046_v31, %v2045_v30  ;;  %v2052_v55 = vld [vmem:[%s3316_s7 + $0x438] sm:$0xff]  ;;  %v2054_v9 = vld [vmem:[%s3316_s7 + $0x448] sm:$0xff]  ;;  %v2057_v36 = vld [vmem:[%s3316_s7 + $0x460] sm:$0xff] }
  0x48   : > { %2901 = vmatpush3.bf16.msra.mxu0 %v2900_v37  ;;  %v2954_v37 = vpack.c.bf16 %v2066_v29, %v2065_v28  ;;  %v2080_v57 = vld [vmem:[%s3316_s7 + $0x518] sm:$0xff]  ;;  %v2082_v13 = vld [vmem:[%s3316_s7 + $0x528] sm:$0xff]  ;;  %v2101_v28 = vld [vmem:[%s3316_s7 + $0x5c0] sm:$0xff] }
  0x49   : > { %2929 = vmatpush3.bf16.msra.mxu1 %v2928_v38  ;;  %2903 = vmatprep.subr.bf16.mxu0 %v2902_v39  ;;  %v2049_v38 = vld [vmem:[%s3316_s7 + $0x420] sm:$0xff]  ;;  %v2050_v39 = vld [vmem:[%s3316_s7 + $0x428] sm:$0xff]  ;;  %v2072_v15 = vld [vmem:[%s3316_s7 + $0x4d8] sm:$0xff] }
  0x4a   : > { %2931 = vmatprep.subr.bf16.mxu1 %v2930_v43  ;;  %v2068_v43 = vld [vmem:[%s3316_s7 + $0x4b8] sm:$0xff]  ;;  %v2956_v48 = vpack.c.bf16 %v2050_v39, %v2049_v38  ;;  %v2074_v27 = vld [vmem:[%s3316_s7 + $0x4e8] sm:$0xff] }
  0x4b   : > { %v2100_v17 = vld [vmem:[%s3316_s7 + $0x5b8] sm:$0xff]  ;;  %v2102_v29 = vld [vmem:[%s3316_s7 + $0x5c8] sm:$0xff] }
  0x4c   : > { %2905 = vmatpush3.bf16.msra.mxu0 %v2904_v50  ;;  %v2958_v50 = vpack.c.bf16 %v2068_v43, %v2067_v42  ;;  %v2990_v24 = vpack.c.bf16 %v2100_v17, %v2099_v16  ;;  %v2084_v25 = vld [vmem:[%s3316_s7 + $0x538] sm:$0xff]  ;;  %v2994_v38 = vpack.c.bf16 %v2102_v29, %v2101_v28  ;;  %v2086_v39 = vld [vmem:[%s3316_s7 + $0x548] sm:$0xff]  ;;  %v2103_v42 = vld [vmem:[%s3316_s7 + $0x5d0] sm:$0xff] }
  0x4d   : > { %2933 = vmatpush3.bf16.msra.mxu1 %v2932_v52  ;;  %2907 = vmatprep.subr.bf16.mxu0 %v2906_v53  ;;  %v2079_v52 = vld [vmem:[%s3316_s7 + $0x510] sm:$0xff]  ;;  %v2076_v41 = vld [vmem:[%s3316_s7 + $0x4f8] sm:$0xff]  ;;  %v2093_v29 = vld [vmem:[%s3316_s7 + $0x580] sm:$0xff] }
  0x4e   : > { %2935 = vmatprep.subr.bf16.mxu1 %v2934_v59  ;;  %v2051_v53 = vld [vmem:[%s3316_s7 + $0x430] sm:$0xff]  ;;  %v2069_v59 = vld [vmem:[%s3316_s7 + $0x4c0] sm:$0xff]  ;;  %v2984_v5 = vpack.c.bf16 %v2080_v57, %v2079_v52  ;;  %v2104_v43 = vld [vmem:[%s3316_s7 + $0x5d8] sm:$0xff] }
  0x4f   : > { %v2960_v4 = vpack.c.bf16 %v2052_v55, %v2051_v53  ;;  %v2060_v52 = vld [vmem:[%s3316_s7 + $0x478] sm:$0xff]  ;;  %v2998_v53 = vpack.c.bf16 %v2104_v43, %v2103_v42  ;;  %v2078_v57 = vld [vmem:[%s3316_s7 + $0x508] sm:$0xff]  ;;  %v2165_v43 = vld [vmem:[%s3316_s7 + $0x7b0] sm:$0xff] }
  0x50   : > { %2909 = vmatpush3.bf16.msra.mxu0 %v2908_v6  ;;  %v2962_v6 = vpack.c.bf16 %v2070_v62, %v2069_v59  ;;  %v2088_v55 = vld [vmem:[%s3316_s7 + $0x558] sm:$0xff]  ;;  %v2105_v59 = vld [vmem:[%s3316_s7 + $0x5e0] sm:$0xff]  ;;  %v2106_v62 = vld [vmem:[%s3316_s7 + $0x5e8] sm:$0xff] }
  0x51   : > { %2937 = vmatpush3.bf16.msra.mxu1 %v2936_v7  ;;  %2911 = vmatprep.subr.bf16.mxu0 %v2910_v8  ;;  %v2081_v7 = vld [vmem:[%s3316_s7 + $0x520] sm:$0xff]  ;;  %v2134_v42 = vld [vmem:[%s3316_s7 + $0x6b8] sm:$0xff] }
  0x52   : > { %2939 = vmatprep.subr.bf16.mxu1 %v2938_v14  ;;  %v2053_v8 = vld [vmem:[%s3316_s7 + $0x440] sm:$0xff]  ;;  %v2071_v14 = vld [vmem:[%s3316_s7 + $0x4d0] sm:$0xff]  ;;  %v2988_v19 = vpack.c.bf16 %v2082_v13, %v2081_v7  ;;  %v2062_v7 = vld [vmem:[%s3316_s7 + $0x488] sm:$0xff] }
  0x53   : > { %v2964_v18 = vpack.c.bf16 %v2054_v9, %v2053_v8  ;;  %v3002_v8 = vpack.c.bf16 %v2106_v62, %v2105_v59  ;;  %v2090_v9 = vld [vmem:[%s3316_s7 + $0x568] sm:$0xff]  ;;  %v2112_v13 = vld [vmem:[%s3316_s7 + $0x618] sm:$0xff]  ;;  %v2167_v62 = vld [vmem:[%s3316_s7 + $0x7c0] sm:$0xff] }
  0x54   : > { %2913 = vmatpush3.bf16.msra.mxu0 %v2912_v20  ;;  %v2966_v20 = vpack.c.bf16 %v2072_v15, %v2071_v14  ;;  %v2107_v14 = vld [vmem:[%s3316_s7 + $0x5f0] sm:$0xff]  ;;  %v2108_v15 = vld [vmem:[%s3316_s7 + $0x5f8] sm:$0xff]  ;;  %v2136_v59 = vld [vmem:[%s3316_s7 + $0x6c8] sm:$0xff] }
  0x55   : > { %2941 = vmatpush3.bf16.msra.mxu1 %v2940_v21  ;;  %2951 = vmatprep.subr.bf16.mxu0 %v2950_v23  ;;  %v2083_v21 = vld [vmem:[%s3316_s7 + $0x530] sm:$0xff]  ;;  %v2056_v23 = vld [vmem:[%s3316_s7 + $0x458] sm:$0xff] }
  0x56   : > { %2943 = vmatprep.subr.bf16.mxu1 %v2942_v26  ;;  %v2073_v26 = vld [vmem:[%s3316_s7 + $0x4e0] sm:$0xff]  ;;  %v2968_v30 = vpack.c.bf16 %v2056_v23, %v2055_v22  ;;  %v2992_v31 = vpack.c.bf16 %v2084_v25, %v2083_v21  ;;  %v2092_v21 = vld [vmem:[%s3316_s7 + $0x578] sm:$0xff]  ;;  %v2132_v23 = vld [vmem:[%s3316_s7 + $0x6a8] sm:$0xff] }
  0x57   : > { %597 = vmatmul.mubr.f32.vlgmr.msra.gmra.mrb[4].mxu0 %v3512_v32  ;;  %v2131_v22 = vld [vmem:[%s3316_s7 + $0x6a0] sm:$0xff]  ;;  %v2110_v25 = vld [vmem:[%s3316_s7 + $0x608] sm:$0xff] }
  0x58   : > { %2953 = vmatpush3.bf16.msra.mxu0 %v2952_v33  ;;  %601 = vmatprep.mubr.f32.mxu0 %v3517_v34  ;;  %v2970_v33 = vpack.c.bf16 %v2074_v27, %v2073_v26  ;;  %v3018_v27 = vpack.c.bf16 %v2132_v23, %v2131_v22  ;;  %v2153_v22 = vld [vmem:[%s3316_s7 + $0x750] sm:$0xff] }
  0x59   : > { %2945 = vmatpush3.bf16.msra.mxu1 %v2944_v35  ;;  %2955 = vmatprep.subr.bf16.mxu0 %v2954_v37  ;;  %v2085_v35 = vld [vmem:[%s3316_s7 + $0x540] sm:$0xff]  ;;  %v2058_v37 = vld [vmem:[%s3316_s7 + $0x468] sm:$0xff] }
  0x5a   : > { %2947 = vmatprep.subr.bf16.mxu1 %v2946_v40  ;;  %v2075_v40 = vld [vmem:[%s3316_s7 + $0x4f0] sm:$0xff]  ;;  %v2972_v44 = vpack.c.bf16 %v2058_v37, %v2057_v36  ;;  %v2996_v45 = vpack.c.bf16 %v2086_v39, %v2085_v35  ;;  %v2115_v36 = vld [vmem:[%s3316_s7 + $0x620] sm:$0xff]  ;;  %v2116_v37 = vld [vmem:[%s3316_s7 + $0x628] sm:$0xff] }
  0x5b   : > { %602 = vmatmul.mubr.f32.gmra.mrb[6].mxu0 %v3532_v46  ;;  %v2147_v39 = vld [vmem:[%s3316_s7 + $0x720] sm:$0xff] }
  0x5c   : > { %2957 = vmatpush3.bf16.msra.mxu0 %v2956_v48  ;;  %920 = vmatprep.mubr.f32.mxu0 %v3306_v2  ;;  %v2974_v48 = vpack.c.bf16 %v2076_v41, %v2075_v40  ;;  %v2148_v40 = vld [vmem:[%s3316_s7 + $0x728] sm:$0xff]  ;;  %v2133_v41 = vld [vmem:[%s3316_s7 + $0x6b0] sm:$0xff] }
  0x5d   : > { %2949 = vmatpush3.bf16.msra.mxu1 %v2948_v49  ;;  %2959 = vmatprep.subr.bf16.mxu0 %v2958_v50  ;;  %v2087_v49 = vld [vmem:[%s3316_s7 + $0x550] sm:$0xff] }
  0x5e   : > { %2983 = vmatprep.subr.bf16.mxu1 %v2982_v56  ;;  %v2059_v50 = vld [vmem:[%s3316_s7 + $0x470] sm:$0xff]  ;;  %v2077_v56 = vld [vmem:[%s3316_s7 + $0x500] sm:$0xff]  ;;  %v3000_v3 = vpack.c.bf16 %v2088_v55, %v2087_v49 }
  0x5f   : > { %v2976_v0 = vpack.c.bf16 %v2060_v52, %v2059_v50  ;;  %v2117_v49 = vld [vmem:[%s3316_s7 + $0x630] sm:$0xff]  ;;  %v2118_v50 = vld [vmem:[%s3316_s7 + $0x638] sm:$0xff] }
  0x60   : > { %846 = vmatmul.mubr.f32.vlgmr.msra.gmra.mrb[6].mxu1 %v3393_v47  ;;  %2961 = vmatpush3.bf16.msra.mxu0 %v2960_v4  ;;  %v2978_v4 = vpack.c.bf16 %v2078_v57, %v2077_v56  ;;  %v2149_v52 = vld [vmem:[%s3316_s7 + $0x730] sm:$0xff]  ;;  %v2150_v56 = vld [vmem:[%s3316_s7 + $0x738] sm:$0xff]  ;;  %v2135_v57 = vld [vmem:[%s3316_s7 + $0x6c0] sm:$0xff] }
  0x61   : > { %2985 = vmatpush3.bf16.msra.mxu1 %v2984_v5  ;;  %2963 = vmatprep.subr.bf16.mxu0 %v2962_v6  ;;  %v2089_v5 = vld [vmem:[%s3316_s7 + $0x560] sm:$0xff] }
  0x62   : > { %2987 = vmatprep.subr.bf16.mxu1 %v2986_v10  ;;  %850 = vmatprep.mubr.f32.mxu1 %v3407_v54  ;;  %v2061_v6 = vld [vmem:[%s3316_s7 + $0x480] sm:$0xff]  ;;  %v2111_v10 = vld [vmem:[%s3316_s7 + $0x610] sm:$0xff]  ;;  %v3004_v17 = vpack.c.bf16 %v2090_v9, %v2089_v5  ;;  %v3026_v5 = vpack.c.bf16 %v2136_v59, %v2135_v57 }
  0x63   : > { %v2980_v16 = vpack.c.bf16 %v2062_v7, %v2061_v6  ;;  %v2119_v6 = vld [vmem:[%s3316_s7 + $0x640] sm:$0xff]  ;;  %v2120_v7 = vld [vmem:[%s3316_s7 + $0x648] sm:$0xff] }
  0x64   : > { %2965 = vmatpush3.bf16.msra.mxu0 %v2964_v18  ;;  %851 = vmatmul.mubr.f32.gmra.mrb[8].mxu1 %v3421_v60  ;;  %v2091_v18 = vld [vmem:[%s3316_s7 + $0x570] sm:$0xff] }
  0x65   : > { %2989 = vmatpush3.bf16.msra.mxu1 %v2988_v19  ;;  %2967 = vmatprep.subr.bf16.mxu0 %v2966_v20  ;;  %v3014_v19 = vpack.c.bf16 %v2112_v13, %v2111_v10  ;;  %v3006_v20 = vpack.c.bf16 %v2108_v15, %v2107_v14  ;;  %v3008_v26 = vpack.c.bf16 %v2092_v21, %v2091_v18  ;;  %v2152_v10 = vld [vmem:[%s3316_s7 + $0x748] sm:$0xff]  ;;  %v2137_v13 = vld [vmem:[%s3316_s7 + $0x6d0] sm:$0xff]  ;;  %v2138_v14 = vld [vmem:[%s3316_s7 + $0x6d8] sm:$0xff] }
  0x66   : > { %2991 = vmatprep.subr.bf16.mxu1 %v2990_v24  ;;  %995 = vmatprep.mubr.f32.mxu1 %v3447_v11  ;;  %v2109_v24 = vld [vmem:[%s3316_s7 + $0x600] sm:$0xff]  ;;  %v2169_v15 = vld [vmem:[%s3316_s7 + $0x7d0] sm:$0xff]  ;;  %v2122_v21 = vld [vmem:[%s3316_s7 + $0x658] sm:$0xff] }
  0x67   : > { %v3010_v28 = vpack.c.bf16 %v2110_v25, %v2109_v24  ;;  %v2154_v24 = vld [vmem:[%s3316_s7 + $0x758] sm:$0xff]  ;;  %v2140_v25 = vld [vmem:[%s3316_s7 + $0x6e8] sm:$0xff] }
  0x68   : > { %2969 = vmatpush3.bf16.msra.mxu0 %v2968_v30  ;;  %v2094_v30 = vld [vmem:[%s3316_s7 + $0x588] sm:$0xff] }
  0x69   : > { %2993 = vmatpush3.bf16.msra.mxu1 %v2992_v31  ;;  %2971 = vmatprep.subr.bf16.mxu0 %v2970_v33  ;;  %v2163_v31 = vld [vmem:[%s3316_s7 + $0x7a0] sm:$0xff]  ;;  %v2164_v33 = vld [vmem:[%s3316_s7 + $0x7a8] sm:$0xff]  ;;  %v3012_v35 = vpack.c.bf16 %v2094_v30, %v2093_v29  ;;  %v3064_v29 = vpack.c.bf16 %v2154_v24, %v2153_v22 }
  0x6a   : > { %2995 = vmatprep.subr.bf16.mxu1 %v2994_v38  ;;  %v3050_v38 = vpack.c.bf16 %v2164_v33, %v2163_v31  ;;  %v2123_v31 = vld [vmem:[%s3316_s7 + $0x660] sm:$0xff]  ;;  %v2124_v33 = vld [vmem:[%s3316_s7 + $0x668] sm:$0xff] }
  0x6b   : > { %v2196_v22 = vld [vmem:[%s3316_s7 + $0x8a8] sm:$0xff] }
  0x6c   : > { %2973 = vmatpush3.bf16.msra.mxu0 %v2972_v44  ;;  %v2166_v44 = vld [vmem:[%s3316_s7 + $0x7b8] sm:$0xff]  ;;  %v2212_v24 = vld [vmem:[%s3316_s7 + $0x928] sm:$0xff] }
  0x6d   : > { %2997 = vmatpush3.bf16.msra.mxu1 %v2996_v45  ;;  %2975 = vmatprep.subr.bf16.mxu0 %v2974_v48  ;;  %v3020_v45 = vpack.c.bf16 %v2116_v37, %v2115_v36  ;;  %v3052_v48 = vpack.c.bf16 %v2148_v40, %v2147_v39  ;;  %v3054_v55 = vpack.c.bf16 %v2166_v44, %v2165_v43  ;;  %v2141_v37 = vld [vmem:[%s3316_s7 + $0x6f0] sm:$0xff]  ;;  %v2174_v40 = vld [vmem:[%s3316_s7 + $0x7f8] sm:$0xff] }
  0x6e   : > { %2999 = vmatprep.subr.bf16.mxu1 %v2998_v53  ;;  %v3022_v53 = vpack.c.bf16 %v2134_v42, %v2133_v41  ;;  %v2173_v39 = vld [vmem:[%s3316_s7 + $0x7f0] sm:$0xff]  ;;  %v3036_v41 = vpack.c.bf16 %v2124_v33, %v2123_v31  ;;  %v2198_v31 = vld [vmem:[%s3316_s7 + $0x8b8] sm:$0xff] }
  0x6f   : > { %v2125_v44 = vld [vmem:[%s3316_s7 + $0x670] sm:$0xff] }
  0x70   : > { %2977 = vmatpush3.bf16.msra.mxu0 %v2976_v0  ;;  %v2168_v0 = vld [vmem:[%s3316_s7 + $0x7c8] sm:$0xff] }
  0x71   : > { %3001 = vmatpush3.bf16.msra.mxu1 %v3000_v3  ;;  %2979 = vmatprep.subr.bf16.mxu0 %v2978_v4  ;;  %v3024_v3 = vpack.c.bf16 %v2118_v50, %v2117_v49  ;;  %v3056_v4 = vpack.c.bf16 %v2150_v56, %v2149_v52  ;;  %v3058_v9 = vpack.c.bf16 %v2168_v0, %v2167_v62  ;;  %v2158_v50 = vld [vmem:[%s3316_s7 + $0x778] sm:$0xff]  ;;  %v2143_v52 = vld [vmem:[%s3316_s7 + $0x700] sm:$0xff]  ;;  %v2176_v56 = vld [vmem:[%s3316_s7 + $0x808] sm:$0xff] }
  0x72   : > { %3003 = vmatprep.subr.bf16.mxu1 %v3002_v8  ;;  %v2151_v8 = vld [vmem:[%s3316_s7 + $0x740] sm:$0xff]  ;;  %v3070_v49 = vpack.c.bf16 %v2174_v40, %v2173_v39  ;;  %v2200_v40 = vld [vmem:[%s3316_s7 + $0x8c8] sm:$0xff] }
  0x73   : > { %v3060_v18 = vpack.c.bf16 %v2152_v10, %v2151_v8  ;;  %v2127_v0 = vld [vmem:[%s3316_s7 + $0x680] sm:$0xff]  ;;  %v2146_v8 = vld [vmem:[%s3316_s7 + $0x718] sm:$0xff] }
  0x74   : > { %2981 = vmatpush3.bf16.msra.mxu0 %v2980_v16  ;;  %v2170_v16 = vld [vmem:[%s3316_s7 + $0x7d8] sm:$0xff]  ;;  %v2199_v39 = vld [vmem:[%s3316_s7 + $0x8c0] sm:$0xff] }
  0x75   : > { %3005 = vmatpush3.bf16.msra.mxu1 %v3004_v17  ;;  %3015 = vmatprep.subr.bf16.mxu0 %v3014_v19  ;;  %v3028_v17 = vpack.c.bf16 %v2120_v7, %v2119_v6  ;;  %v3062_v23 = vpack.c.bf16 %v2170_v16, %v2169_v15  ;;  %v2160_v6 = vld [vmem:[%s3316_s7 + $0x788] sm:$0xff]  ;;  %v2145_v7 = vld [vmem:[%s3316_s7 + $0x710] sm:$0xff]  ;;  %v2178_v10 = vld [vmem:[%s3316_s7 + $0x818] sm:$0xff] }
  0x76   : > { %3007 = vmatprep.subr.bf16.mxu1 %v3006_v20  ;;  %v2121_v20 = vld [vmem:[%s3316_s7 + $0x650] sm:$0xff]  ;;  %v3046_v15 = vpack.c.bf16 %v2146_v8, %v2145_v7  ;;  %v2187_v7 = vld [vmem:[%s3316_s7 + $0x860] sm:$0xff]  ;;  %v2188_v8 = vld [vmem:[%s3316_s7 + $0x868] sm:$0xff] }
  0x77   : > { %921 = vmatmul.mubr.f32.vlgmr.msra.gmra.mrb[8].mxu0 %v3400_v51  ;;  %v2129_v16 = vld [vmem:[%s3316_s7 + $0x690] sm:$0xff] }
  0x78   : > { %925 = vmatprep.mubr.f32.mxu0 %v3415_v58  ;;  %3017 = vmatpush3.bf16.msra.mxu0 %v3014_v19  ;;  %v3030_v19 = vpack.c.bf16 %v2138_v14, %v2137_v13 }
  0x79   : > { %3009 = vmatpush3.bf16.msra.mxu1 %v3008_v26  ;;  %3019 = vmatprep.subr.bf16.mxu0 %v3018_v27  ;;  %v2171_v26 = vld [vmem:[%s3316_s7 + $0x7e0] sm:$0xff]  ;;  %v2172_v27 = vld [vmem:[%s3316_s7 + $0x7e8] sm:$0xff] }
  0x7a   : > { %3011 = vmatprep.subr.bf16.mxu1 %v3010_v28  ;;  %v3032_v28 = vpack.c.bf16 %v2122_v21, %v2121_v20  ;;  %v3066_v36 = vpack.c.bf16 %v2172_v27, %v2171_v26  ;;  %v2162_v20 = vld [vmem:[%s3316_s7 + $0x798] sm:$0xff]  ;;  %v2195_v21 = vld [vmem:[%s3316_s7 + $0x8a0] sm:$0xff] }
  0x7b   : > { %926 = vmatmul.mubr.f32.gmra.mrb[10].mxu0 %v3426_v61  ;;  %v3082_v26 = vpack.c.bf16 %v2196_v22, %v2195_v21  ;;  %v2179_v27 = vld [vmem:[%s3316_s7 + $0x820] sm:$0xff]  ;;  %v2190_v21 = vld [vmem:[%s3316_s7 + $0x878] sm:$0xff] }
  0x7c   : > { %2801 = vmatprep.mubr.msk.f32.mxu0 %vm375_vm0, %v3431_v63 }
  0x7d   : > { %3013 = vmatpush3.bf16.msra.mxu1 %v3012_v35  ;;  %v2155_v35 = vld [vmem:[%s3316_s7 + $0x760] sm:$0xff] }
  0x7e   : > { %3051 = vmatprep.subr.bf16.mxu1 %v3050_v38  ;;  %v2142_v38 = vld [vmem:[%s3316_s7 + $0x6f8] sm:$0xff] }
  0x7f   : > { %2802 = vmatmul.mubr.msk.f32.vlgmr.msra.gmra.mrb[12].mxu0 %vm375_vm0, %v3453_v12  ;;  %v3038_v43 = vpack.c.bf16 %v2142_v38, %v2141_v37  ;;  %v2182_v37 = vld [vmem:[%s3316_s7 + $0x838] sm:$0xff] }
  0x80   : > { %996 = vmatmul.mubr.f32.vlgmr.msra.gmra.mrb[10].mxu1 %v3512_v32  ;;  %3021 = vmatpush3.bf16.msra.mxu0 %v3020_v45  ;;  %v2126_v45 = vld [vmem:[%s3316_s7 + $0x678] sm:$0xff] }
  0x81   : > { %3053 = vmatpush3.bf16.msra.mxu1 %v3052_v48  ;;  %1000 = vmatprep.mubr.f32.mxu1 %v3517_v34  ;;  %v2157_v48 = vld [vmem:[%s3316_s7 + $0x770] sm:$0xff]  ;;  %v3040_v57 = vpack.c.bf16 %v2126_v45, %v2125_v44  ;;  %v2183_v45 = vld [vmem:[%s3316_s7 + $0x840] sm:$0xff] }
  0x82   : > { %3023 = vmatprep.subr.bf16.mxu0 %v3022_v53  ;;  %3055 = vmatprep.subr.bf16.mxu1 %v3054_v55  ;;  %v2144_v53 = vld [vmem:[%s3316_s7 + $0x708] sm:$0xff]  ;;  %v2175_v55 = vld [vmem:[%s3316_s7 + $0x800] sm:$0xff]  ;;  %v3072_v59 = vpack.c.bf16 %v2158_v50, %v2157_v48  ;;  %v2215_v44 = vld [vmem:[%s3316_s7 + $0x930] sm:$0xff] }
  0x83   : > { %1246 = vmatprep.mubr.f32.mxu0 %v3301_v1  ;;  %v2139_v1 = vld [vmem:[%s3316_s7 + $0x6e0] sm:$0xff]  ;;  %v3042_v62 = vpack.c.bf16 %v2144_v53, %v2143_v52  ;;  %v2184_v48 = vld [vmem:[%s3316_s7 + $0x848] sm:$0xff] }
  0x84   : > { %1001 = vmatmul.mubr.f32.gmra.mrb[12].mxu1 %v3532_v46  ;;  %3025 = vmatpush3.bf16.msra.mxu0 %v3024_v3  ;;  %v3034_v30 = vpack.c.bf16 %v2140_v25, %v2139_v1  ;;  %v2128_v3 = vld [vmem:[%s3316_s7 + $0x688] sm:$0xff] }
  0x85   : > { %3057 = vmatpush3.bf16.msra.mxu1 %v3056_v4  ;;  %3027 = vmatprep.subr.bf16.mxu0 %v3026_v5  ;;  %v2159_v4 = vld [vmem:[%s3316_s7 + $0x780] sm:$0xff]  ;;  %v3074_v5 = vpack.c.bf16 %v2176_v56, %v2175_v55  ;;  %v3044_v13 = vpack.c.bf16 %v2128_v3, %v2127_v0  ;;  %v2234_v50 = vld [vmem:[%s3316_s7 + $0x9c8] sm:$0xff]  ;;  %v2185_v56 = vld [vmem:[%s3316_s7 + $0x850] sm:$0xff] }
  0x86   : > { %3059 = vmatprep.subr.bf16.mxu1 %v3058_v9  ;;  %1321 = vmatprep.mubr.f32.mxu1 %v3306_v2  ;;  %v2156_v2 = vld [vmem:[%s3316_s7 + $0x768] sm:$0xff]  ;;  %v2177_v9 = vld [vmem:[%s3316_s7 + $0x810] sm:$0xff]  ;;  %v3076_v14 = vpack.c.bf16 %v2160_v6, %v2159_v4  ;;  %v2217_v55 = vld [vmem:[%s3316_s7 + $0x940] sm:$0xff] }
  0x87   : > { %v3068_v42 = vpack.c.bf16 %v2156_v2, %v2155_v35  ;;  %v2231_v35 = vld [vmem:[%s3316_s7 + $0x9b0] sm:$0xff]  ;;  %v2204_v0 = vld [vmem:[%s3316_s7 + $0x8e8] sm:$0xff] }
  0x88   : > { %3029 = vmatpush3.bf16.msra.mxu0 %v3028_v17  ;;  %v2130_v17 = vld [vmem:[%s3316_s7 + $0x698] sm:$0xff]  ;;  %v2181_v2 = vld [vmem:[%s3316_s7 + $0x830] sm:$0xff] }
  0x89   : > { %3061 = vmatpush3.bf16.msra.mxu1 %v3060_v18  ;;  %3031 = vmatprep.subr.bf16.mxu0 %v3030_v19  ;;  %v2161_v18 = vld [vmem:[%s3316_s7 + $0x790] sm:$0xff]  ;;  %v3078_v19 = vpack.c.bf16 %v2178_v10, %v2177_v9  ;;  %v3048_v1 = vpack.c.bf16 %v2130_v17, %v2129_v16  ;;  %v2220_v9 = vld [vmem:[%s3316_s7 + $0x958] sm:$0xff]  ;;  %v3100_v16 = vpack.c.bf16 %v2188_v8, %v2187_v7  ;;  %v2229_v8 = vld [vmem:[%s3316_s7 + $0x9a0] sm:$0xff] }
  0x8a   : > { %3063 = vmatprep.subr.bf16.mxu1 %v3062_v23  ;;  %v2211_v23 = vld [vmem:[%s3316_s7 + $0x920] sm:$0xff]  ;;  %v3080_v25 = vpack.c.bf16 %v2162_v20, %v2161_v18  ;;  %v2219_v6 = vld [vmem:[%s3316_s7 + $0x950] sm:$0xff] }
  0x8b   : > { %v2205_v10 = vld [vmem:[%s3316_s7 + $0x8f0] sm:$0xff]  ;;  %v3128_v17 = vpack.c.bf16 %v2220_v9, %v2219_v6  ;;  %v2249_v9 = vld [vmem:[%s3316_s7 + $0xa40] sm:$0xff] }
  0x8c   : > { %3033 = vmatpush3.bf16.msra.mxu0 %v3032_v28  ;;  %v2180_v28 = vld [vmem:[%s3316_s7 + $0x828] sm:$0xff]  ;;  %v2189_v20 = vld [vmem:[%s3316_s7 + $0x870] sm:$0xff] }
  0x8d   : > { %3065 = vmatpush3.bf16.msra.mxu1 %v3064_v29  ;;  %3035 = vmatprep.subr.bf16.mxu0 %v3034_v30  ;;  %v3114_v29 = vpack.c.bf16 %v2212_v24, %v2211_v23  ;;  %v2197_v30 = vld [vmem:[%s3316_s7 + $0x8b0] sm:$0xff]  ;;  %v3084_v33 = vpack.c.bf16 %v2180_v28, %v2179_v27  ;;  %v2222_v23 = vld [vmem:[%s3316_s7 + $0x968] sm:$0xff]  ;;  %v2207_v24 = vld [vmem:[%s3316_s7 + $0x900] sm:$0xff]  ;;  %v3104_v27 = vpack.c.bf16 %v2190_v21, %v2189_v20 }
  0x8e   : > { %3067 = vmatprep.subr.bf16.mxu1 %v3066_v36  ;;  %v2232_v36 = vld [vmem:[%s3316_s7 + $0x9b8] sm:$0xff]  ;;  %v3086_v38 = vpack.c.bf16 %v2198_v31, %v2197_v30  ;;  %v2223_v30 = vld [vmem:[%s3316_s7 + $0x970] sm:$0xff]  ;;  %v2191_v31 = vld [vmem:[%s3316_s7 + $0x880] sm:$0xff] }
  0x8f   : > { %v2279_v21 = vld [vmem:[%s3316_s7 + $0xb30] sm:$0xff] }
  0x90   : > { %3037 = vmatpush3.bf16.msra.mxu0 %v3036_v41  ;;  %v3118_v41 = vpack.c.bf16 %v2232_v36, %v2231_v35  ;;  %v2224_v36 = vld [vmem:[%s3316_s7 + $0x978] sm:$0xff] }
  0x91   : > { %3069 = vmatpush3.bf16.msra.mxu1 %v3068_v42  ;;  %3039 = vmatprep.subr.bf16.mxu0 %v3038_v43  ;;  %v3088_v42 = vpack.c.bf16 %v2182_v37, %v2181_v2  ;;  %v3090_v43 = vpack.c.bf16 %v2200_v40, %v2199_v39  ;;  %v2209_v2 = vld [vmem:[%s3316_s7 + $0x910] sm:$0xff]  ;;  %v2210_v37 = vld [vmem:[%s3316_s7 + $0x918] sm:$0xff]  ;;  %v2242_v39 = vld [vmem:[%s3316_s7 + $0xa08] sm:$0xff] }
  0x92   : > { %3071 = vmatprep.subr.bf16.mxu1 %v3070_v49  ;;  %v2201_v49 = vld [vmem:[%s3316_s7 + $0x8d0] sm:$0xff] }
  0x94   : > { %3041 = vmatpush3.bf16.msra.mxu0 %v3040_v57 }
  0x95   : > { %3073 = vmatpush3.bf16.msra.mxu1 %v3072_v59  ;;  %3043 = vmatprep.subr.bf16.mxu0 %v3042_v62  ;;  %v2218_v59 = vld [vmem:[%s3316_s7 + $0x948] sm:$0xff]  ;;  %v2203_v62 = vld [vmem:[%s3316_s7 + $0x8e0] sm:$0xff] }
  0x96   : > { %3075 = vmatprep.subr.bf16.mxu1 %v3074_v5  ;;  %v3124_v4 = vpack.c.bf16 %v2218_v59, %v2217_v55  ;;  %v3098_v5 = vpack.c.bf16 %v2204_v0, %v2203_v62  ;;  %v1886_v55 = vld [vmem:[%s3885_s2 + $0x8] sm:$0xff]  ;;  %v2247_v59 = vld [vmem:[%s3316_s7 + $0xa30] sm:$0xff]  ;;  %v2248_v62 = vld [vmem:[%s3316_s7 + $0xa38] sm:$0xff] }
  0x97   : > { %v3152_v6 = vpack.c.bf16 %v2248_v62, %v2247_v59  ;;  %v2257_v59 = vld [vmem:[%s3316_s7 + $0xa80] sm:$0xff]  ;;  %v2258_v62 = vld [vmem:[%s3316_s7 + $0xa88] sm:$0xff] }
  0x98   : > { %3045 = vmatpush3.bf16.msra.mxu0 %v3044_v13  ;;  %v2206_v13 = vld [vmem:[%s3316_s7 + $0x8f8] sm:$0xff] }
  0x99   : > { %3077 = vmatpush3.bf16.msra.mxu1 %v3076_v14  ;;  %3047 = vmatprep.subr.bf16.mxu0 %v3046_v15  ;;  %v2237_v14 = vld [vmem:[%s3316_s7 + $0x9e0] sm:$0xff]  ;;  %v2238_v15 = vld [vmem:[%s3316_s7 + $0x9e8] sm:$0xff]  ;;  %v3102_v18 = vpack.c.bf16 %v2206_v13, %v2205_v10 }
  0x9a   : > { %3079 = vmatprep.subr.bf16.mxu1 %v3078_v19  ;;  %v2221_v19 = vld [vmem:[%s3316_s7 + $0x960] sm:$0xff]  ;;  %v3130_v22 = vpack.c.bf16 %v2238_v15, %v2237_v14  ;;  %v2250_v10 = vld [vmem:[%s3316_s7 + $0xa48] sm:$0xff]  ;;  %v2267_v14 = vld [vmem:[%s3316_s7 + $0xad0] sm:$0xff] }
  0x9b   : > { %v3132_v28 = vpack.c.bf16 %v2222_v23, %v2221_v19  ;;  %v2268_v15 = vld [vmem:[%s3316_s7 + $0xad8] sm:$0xff] }
  0x9c   : > { %3049 = vmatpush3.bf16.msra.mxu0 %v3048_v1  ;;  %v2208_v1 = vld [vmem:[%s3316_s7 + $0x908] sm:$0xff]  ;;  %v3158_v20 = vpack.c.bf16 %v2268_v15, %v2267_v14  ;;  %v2252_v23 = vld [vmem:[%s3316_s7 + $0xa58] sm:$0xff]  ;;  %v2277_v15 = vld [vmem:[%s3316_s7 + $0xb20] sm:$0xff] }
  0x9d   : > { %3081 = vmatpush3.bf16.msra.mxu1 %v3080_v25  ;;  %3083 = vmatprep.subr.bf16.mxu0 %v3082_v26  ;;  %v2239_v25 = vld [vmem:[%s3316_s7 + $0x9f0] sm:$0xff]  ;;  %v2240_v26 = vld [vmem:[%s3316_s7 + $0x9f8] sm:$0xff] }
  0x9e   : > { %3115 = vmatprep.subr.bf16.mxu1 %v3114_v29  ;;  %v3134_v35 = vpack.c.bf16 %v2240_v26, %v2239_v25  ;;  %v2270_v25 = vld [vmem:[%s3316_s7 + $0xae8] sm:$0xff]  ;;  %v2288_v14 = vld [vmem:[%s3316_s7 + $0xb78] sm:$0xff] }
  0x9f   : > { %1247 = vmatmul.mubr.f32.vlgmr.msra.gmra.mrb[14].mxu0 %v3393_v47  ;;  %v2216_v47 = vld [vmem:[%s3316_s7 + $0x938] sm:$0xff]  ;;  %v2298_v26 = vld [vmem:[%s3316_s7 + $0xbc8] sm:$0xff] }
  0xa0   : > { %1322 = vmatmul.mubr.f32.vlgmr.msra.gmra.mrb[14].mxu1 %v3400_v51  ;;  %3085 = vmatpush3.bf16.msra.mxu0 %v3084_v33  ;;  %v2202_v51 = vld [vmem:[%s3316_s7 + $0x8d8] sm:$0xff]  ;;  %v3120_v52 = vpack.c.bf16 %v2216_v47, %v2215_v44  ;;  %v2192_v33 = vld [vmem:[%s3316_s7 + $0x888] sm:$0xff]  ;;  %v2193_v44 = vld [vmem:[%s3316_s7 + $0x890] sm:$0xff] }
  0xa1   : > { %3117 = vmatpush3.bf16.msra.mxu1 %v3114_v29  ;;  %1251 = vmatprep.mubr.f32.mxu0 %v3407_v54  ;;  %v2233_v54 = vld [vmem:[%s3316_s7 + $0x9c0] sm:$0xff]  ;;  %v3094_v53 = vpack.c.bf16 %v2202_v51, %v2201_v49  ;;  %v3106_v29 = vpack.c.bf16 %v2208_v1, %v2207_v24  ;;  %v3108_v40 = vpack.c.bf16 %v2192_v33, %v2191_v31  ;;  %v2226_v49 = vld [vmem:[%s3316_s7 + $0x988] sm:$0xff]  ;;  %v2263_v51 = vld [vmem:[%s3316_s7 + $0xab0] sm:$0xff] }
  0xa2   : > { %1326 = vmatprep.mubr.f32.mxu1 %v3415_v58  ;;  %3087 = vmatprep.subr.bf16.mxu0 %v3086_v38  ;;  %v3092_v58 = vpack.c.bf16 %v2184_v48, %v2183_v45  ;;  %v3122_v57 = vpack.c.bf16 %v2234_v50, %v2233_v54  ;;  %v2241_v38 = vld [vmem:[%s3316_s7 + $0xa00] sm:$0xff]  ;;  %v2194_v45 = vld [vmem:[%s3316_s7 + $0x898] sm:$0xff]  ;;  %v3251_v50 = vmov 0   ;;  %v2254_v33 = vld [vmem:[%s3316_s7 + $0xa68] sm:$0xff] }
  0xa3   : > { %1252 = vmatmul.mubr.f32.gmra.mrb[16].mxu0 %v3421_v60  ;;  %3119 = vmatprep.subr.bf16.mxu1 %v3118_v41  ;;  %v2186_v60 = vld [vmem:[%s3316_s7 + $0x858] sm:$0xff]  ;;  %v2225_v41 = vld [vmem:[%s3316_s7 + $0x980] sm:$0xff]  ;;  %v3138_v47 = vpack.c.bf16 %v2242_v39, %v2241_v38  ;;  %v2299_v38 = vld [vmem:[%s3316_s7 + $0xbd0] sm:$0xff] }
  0xa4   : > { %1327 = vmatmul.mubr.f32.gmra.mrb[16].mxu1 %v3426_v61  ;;  %3089 = vmatpush3.bf16.msra.mxu0 %v3088_v42  ;;  %v2235_v61 = vld [vmem:[%s3316_s7 + $0x9d0] sm:$0xff]  ;;  %v3096_v3 = vpack.c.bf16 %v2186_v60, %v2185_v56  ;;  %v3136_v42 = vpack.c.bf16 %v2224_v36, %v2223_v30  ;;  %v1885_v48 = vld [vmem:[%s3885_s2] sm:$0xff]  ;;  %v2264_v54 = vld [vmem:[%s3316_s7 + $0xab8] sm:$0xff]  ;;  %v3140_v56 = vpack.c.bf16 %v2226_v49, %v2225_v41 }
  0xa5   : > { %2808 = vmatprep.mubr.msk.f32.mxu1 %vm375_vm0, %v3431_v63  ;;  %3091 = vmatprep.subr.bf16.mxu0 %v3090_v43  ;;  %v2236_v63 = vld [vmem:[%s3316_s7 + $0x9d8] sm:$0xff]  ;;  %v3110_v43 = vpack.c.bf16 %v2210_v37, %v2209_v2  ;;  %v2227_v60 = vld [vmem:[%s3316_s7 + $0x990] sm:$0xff]  ;;  %v2269_v1 = vld [vmem:[%s3316_s7 + $0xae0] sm:$0xff] }
  0xa6   : > { %1396 = vmatprep.mubr.f32.mxu0 %v3447_v11  ;;  %v3126_v11 = vpack.c.bf16 %v2236_v63, %v2235_v61  ;;  %3228 = vset.pattern.permute.xlu0 %v3251_v50  ;;  %v2228_v61 = vld [vmem:[%s3316_s7 + $0x998] sm:$0xff]  ;;  %v2265_v63 = vld [vmem:[%s3316_s7 + $0xac0] sm:$0xff]  ;;  %v3162_v30 = vpack.c.bf16 %v2270_v25, %v2269_v1  ;;  %v2282_v36 = vld [vmem:[%s3316_s7 + $0xb48] sm:$0xff] }
  0xa7   : > { %1889 = vperm.xlu0 %3228, %v1885_v48   ;;  %v3144_v7 = vpack.c.bf16 %v2228_v61, %v2227_v60  ;;  %v2280_v24 = vld [vmem:[%s3316_s7 + $0xb38] sm:$0xff]  ;;  %v2281_v31 = vld [vmem:[%s3316_s7 + $0xb40] sm:$0xff]  ;;  %v2271_v2 = vld [vmem:[%s3316_s7 + $0xaf0] sm:$0xff] }
  0xa8   : > { %2809 = vmatmul.mubr.msk.f32.vlgmr.msra.gmra.mrb[18].mxu1 %vm375_vm0, %v3453_v12  ;;  %3093 = vmatpush3.bf16.msra.mxu0 %v3092_v58  ;;  %v3229_v12 = vld [vmem:[%s3884_s1 + $0x8] sm:$0xff]  ;;  %v2243_v58 = vld [vmem:[%s3316_s7 + $0xa10] sm:$0xff]  ;;  %v2272_v37 = vld [vmem:[%s3316_s7 + $0xaf8] sm:$0xff] }
  0xa9   : > { %3121 = vmatpush3.bf16.msra.mxu1 %v3120_v52  ;;  %3095 = vmatprep.subr.bf16.mxu0 %v3094_v53  ;;  %v2244_v52 = vld [vmem:[%s3316_s7 + $0xa18] sm:$0xff]  ;;  %v3112_v53 = vpack.c.bf16 %v2194_v45, %v2193_v44  ;;  %v2283_v44 = vld [vmem:[%s3316_s7 + $0xb50] sm:$0xff]  ;;  %v3232_v50 = vld [vmem:[%s3884_s1 + $0x40] sm:$0xff] }
  0xaa   : > { %3123 = vmatprep.subr.bf16.mxu1 %v3122_v57  ;;  %1647 = vmatprep.mubr.f32.mxu1 %v3229_v12  ;;  %v3150_v57 = vpack.c.bf16 %v2264_v54, %v2263_v51  ;;  %v3142_v0 = vpack.c.bf16 %v2244_v52, %v2243_v58  ;;  %v2230_v12 = vld [vmem:[%s3316_s7 + $0x9a8] sm:$0xff]  ;;  %v2300_v39 = vld [vmem:[%s3316_s7 + $0xbd8] sm:$0xff]  ;;  %v2255_v45 = vld [vmem:[%s3316_s7 + $0xa70] sm:$0xff] }
  0xab   : > { %1894 = vperm.xlu0 %3228, %v1886_v55   ;;  %v3148_v19 = vpack.c.bf16 %v2230_v12, %v2229_v8  ;;  %v2256_v48 = vld [vmem:[%s3316_s7 + $0xa78] sm:$0xff]  ;;  %v2273_v51 = vld [vmem:[%s3316_s7 + $0xb00] sm:$0xff]  ;;  %v2274_v54 = vld [vmem:[%s3316_s7 + $0xb08] sm:$0xff] }
  0xac   : > { %3097 = vmatpush3.bf16.msra.mxu0 %v3096_v3  ;;  %v2266_v3 = vld [vmem:[%s3316_s7 + $0xac8] sm:$0xff]  ;;  %v2284_v49 = vld [vmem:[%s3316_s7 + $0xb58] sm:$0xff]  ;;  %v2301_v58 = vld [vmem:[%s3316_s7 + $0xbe0] sm:$0xff]  ;;  %v3170_v60 = vpack.c.bf16 %v2274_v54, %v2273_v51 }
  0xad   : > { %3125 = vmatpush3.bf16.msra.mxu1 %v3124_v4  ;;  %3099 = vmatprep.subr.bf16.mxu0 %v3098_v5  ;;  %v2245_v4 = vld [vmem:[%s3316_s7 + $0xa20] sm:$0xff]  ;;  %v2246_v5 = vld [vmem:[%s3316_s7 + $0xa28] sm:$0xff]  ;;  %v3233_v55 = vld [vmem:[%s3884_s1 + $0x38] sm:$0xff] }
  0xae   : > { %3127 = vmatprep.subr.bf16.mxu1 %v3126_v11  ;;  %v3154_v11 = vpack.c.bf16 %v2266_v3, %v2265_v63  ;;  %v3146_v13 = vpack.c.bf16 %v2246_v5, %v2245_v4  ;;  %v2302_v52 = vld [vmem:[%s3316_s7 + $0xbe8] sm:$0xff]  ;;  %v2275_v63 = vld [vmem:[%s3316_s7 + $0xb10] sm:$0xff]  ;;  %v2276_v3 = vld [vmem:[%s3316_s7 + $0xb18] sm:$0xff] }
  0xaf   : > { %v2286_v61 = vld [vmem:[%s3316_s7 + $0xb68] sm:$0xff]  ;;  %v2303_v5 = vld [vmem:[%s3316_s7 + $0xbf0] sm:$0xff] }
  0xb0   : > { %3101 = vmatpush3.bf16.msra.mxu0 %v3100_v16  ;;  %v2295_v16 = vld [vmem:[%s3316_s7 + $0xbb0] sm:$0xff]  ;;  %v3234_v4 = vld [vmem:[%s3884_s1 + $0x28] sm:$0xff] }
  0xb1   : > { %3129 = vmatpush3.bf16.msra.mxu1 %v3128_v17  ;;  %3103 = vmatprep.subr.bf16.mxu0 %v3102_v18  ;;  %v2296_v17 = vld [vmem:[%s3316_s7 + $0xbb8] sm:$0xff]  ;;  %v3156_v18 = vpack.c.bf16 %v2250_v10, %v2249_v9  ;;  %v2287_v9 = vld [vmem:[%s3316_s7 + $0xb70] sm:$0xff]  ;;  %v2290_v1 = vld [vmem:[%s3316_s7 + $0xb88] sm:$0xff] }
  0xb2   : > { %3131 = vmatprep.subr.bf16.mxu1 %v3130_v22  ;;  %v2251_v22 = vld [vmem:[%s3316_s7 + $0xa50] sm:$0xff] }
  0xb3   : > { %v2259_v10 = vld [vmem:[%s3316_s7 + $0xa90] sm:$0xff] }
  0xb4   : > { %3105 = vmatpush3.bf16.msra.mxu0 %v3104_v27  ;;  %v3160_v27 = vpack.c.bf16 %v2252_v23, %v2251_v22  ;;  %v2289_v22 = vld [vmem:[%s3316_s7 + $0xb80] sm:$0xff]  ;;  %v2311_v25 = vld [vmem:[%s3316_s7 + $0xc30] sm:$0xff] }
  0xb5   : > { %3133 = vmatpush3.bf16.msra.mxu1 %v3132_v28  ;;  %3107 = vmatprep.subr.bf16.mxu0 %v3106_v29  ;;  %v3230_v28 = vld [vmem:[%s3884_s1 + $0x18] sm:$0xff]  ;;  %v3184_v29 = vpack.c.bf16 %v2280_v24, %v2279_v21  ;;  %v2261_v23 = vld [vmem:[%s3316_s7 + $0xaa0] sm:$0xff] }
  0xb6   : > { %3135 = vmatprep.subr.bf16.mxu1 %v3134_v35 }
  0xb8   : > { %3109 = vmatpush3.bf16.msra.mxu0 %v3108_v40  ;;  %v3231_v40 = vld [vmem:[%s3884_s1] sm:$0xff] }
  0xb9   : > { %3137 = vmatpush3.bf16.msra.mxu1 %v3136_v42  ;;  %3111 = vmatprep.subr.bf16.mxu0 %v3110_v43  ;;  %v3188_v42 = vpack.c.bf16 %v2282_v36, %v2281_v31  ;;  %v3166_v43 = vpack.c.bf16 %v2272_v37, %v2271_v2  ;;  %v2310_v36 = vld [vmem:[%s3316_s7 + $0xc28] sm:$0xff] }
  0xba   : > { %3139 = vmatprep.subr.bf16.mxu1 %v3138_v47  ;;  %v3190_v47 = vpack.c.bf16 %v2300_v39, %v2299_v38  ;;  %v2293_v38 = vld [vmem:[%s3316_s7 + $0xba0] sm:$0xff]  ;;  %v2294_v39 = vld [vmem:[%s3316_s7 + $0xba8] sm:$0xff] }
  0xbc   : > { %3113 = vmatpush3.bf16.msra.mxu0 %v3112_v53  ;;  %v3168_v53 = vpack.c.bf16 %v2256_v48, %v2255_v45  ;;  %v3239_v45 = vld [vmem:[%s3884_s1 + $0x68] sm:$0xff]  ;;  %v3240_v48 = vld [vmem:[%s3884_s1 + $0x20] sm:$0xff] }
  0xbd   : > { %3141 = vmatpush3.bf16.msra.mxu1 %v3140_v56  ;;  %3151 = vmatprep.subr.bf16.mxu0 %v3150_v57  ;;  %v3192_v56 = vpack.c.bf16 %v2284_v49, %v2283_v44  ;;  %v2285_v57 = vld [vmem:[%s3316_s7 + $0xb60] sm:$0xff]  ;;  %v3238_v44 = vld [vmem:[%s3884_s1 + $0x30] sm:$0xff]  ;;  %v3242_v49 = vld [vmem:[%s3884_s1 + $0x58] sm:$0xff] }
  0xbe   : > { %3143 = vmatprep.subr.bf16.mxu1 %v3142_v0  ;;  %v3194_v0 = vpack.c.bf16 %v2302_v52, %v2301_v58  ;;  %v3196_v8 = vpack.c.bf16 %v2286_v61, %v2285_v57 }
  0xbf   : > { %1397 = vmatmul.mubr.f32.vlgmr.msra.gmra.mrb[18].mxu0 %v3512_v32  ;;  %v3182_v32 = vpack.c.bf16 %v2296_v17, %v2295_v16  ;;  %v2278_v16 = vld [vmem:[%s3316_s7 + $0xb28] sm:$0xff]  ;;  %v2305_v17 = vld [vmem:[%s3316_s7 + $0xc00] sm:$0xff] }
  0xc0   : > { %3153 = vmatpush3.bf16.msra.mxu0 %v3152_v6  ;;  %1401 = vmatprep.mubr.f32.mxu0 %v3517_v34  ;;  %v2297_v34 = vld [vmem:[%s3316_s7 + $0xbc0] sm:$0xff]  ;;  %v2304_v6 = vld [vmem:[%s3316_s7 + $0xbf8] sm:$0xff]  ;;  %v3178_v21 = vpack.c.bf16 %v2278_v16, %v2277_v15 }
  0xc1   : > { %3145 = vmatpush3.bf16.msra.mxu1 %v3144_v7  ;;  %3155 = vmatprep.subr.bf16.mxu0 %v3154_v11  ;;  %v3186_v35 = vpack.c.bf16 %v2298_v26, %v2297_v34  ;;  %v3172_v7 = vpack.c.bf16 %v2258_v62, %v2257_v59  ;;  %v3174_v11 = vpack.c.bf16 %v2276_v3, %v2275_v63  ;;  %v2312_v34 = vld [vmem:[%s3316_s7 + $0xc38] sm:$0xff]  ;;  %v2307_v26 = vld [vmem:[%s3316_s7 + $0xc10] sm:$0xff] }
  0xc2   : > { %3147 = vmatprep.subr.bf16.mxu1 %v3146_v13  ;;  %v2260_v13 = vld [vmem:[%s3316_s7 + $0xa98] sm:$0xff]  ;;  %v3198_v12 = vpack.c.bf16 %v2304_v6, %v2303_v5 }
  0xc3   : > { %1402 = vmatmul.mubr.f32.gmra.mrb[20].mxu0 %v3532_v46  ;;  %v2253_v46 = vld [vmem:[%s3316_s7 + $0xa60] sm:$0xff] }
  0xc4   : > { %3157 = vmatpush3.bf16.msra.mxu0 %v3156_v18  ;;  %1722 = vmatprep.mubr.f32.mxu0 %v3230_v28  ;;  %v3164_v41 = vpack.c.bf16 %v2254_v33, %v2253_v46  ;;  %v2306_v18 = vld [vmem:[%s3316_s7 + $0xc08] sm:$0xff]  ;;  %v2291_v46 = vld [vmem:[%s3316_s7 + $0xb90] sm:$0xff]  ;;  %v2292_v33 = vld [vmem:[%s3316_s7 + $0xb98] sm:$0xff] }
  0xc5   : > { %3149 = vmatpush3.bf16.msra.mxu1 %v3148_v19  ;;  %3159 = vmatprep.subr.bf16.mxu0 %v3158_v20  ;;  %v3176_v19 = vpack.c.bf16 %v2260_v13, %v2259_v10  ;;  %v3200_v20 = vpack.c.bf16 %v2288_v14, %v2287_v9  ;;  %v3202_v24 = vpack.c.bf16 %v2306_v18, %v2305_v17 }
  0xc6   : > { %3183 = vmatprep.subr.bf16.mxu1 %v3182_v32  ;;  %v2262_v32 = vld [vmem:[%s3316_s7 + $0xaa8] sm:$0xff]  ;;  %v3208_v2 = vpack.c.bf16 %v2292_v33, %v2291_v46 }
  0xc7   : > { %v3180_v28 = vpack.c.bf16 %v2262_v32, %v2261_v23 }
  0xc8   : > { %1648 = vmatmul.mubr.f32.vlgmr.msra.gmra.mrb[20].mxu1 %v3231_v40  ;;  %3161 = vmatpush3.bf16.msra.mxu0 %v3160_v27  ;;  %v2308_v27 = vld [vmem:[%s3316_s7 + $0xc18] sm:$0xff]  ;;  %v3235_v40 = vld [vmem:[%s3884_s1 + $0x10] sm:$0xff] }
  0xc9   : > { %3185 = vmatpush3.bf16.msra.mxu1 %v3184_v29  ;;  %3163 = vmatprep.subr.bf16.mxu0 %v3162_v30  ;;  %v3204_v29 = vpack.c.bf16 %v2290_v1, %v2289_v22  ;;  %v3214_v30 = vpack.c.bf16 %v2312_v34, %v2311_v25  ;;  %v3206_v31 = vpack.c.bf16 %v2308_v27, %v2307_v26 }
  0xca   : > { %3187 = vmatprep.subr.bf16.mxu1 %v3186_v35  ;;  %1652 = vmatprep.mubr.f32.mxu1 %v3232_v50  ;;  %v2309_v35 = vld [vmem:[%s3316_s7 + $0xc20] sm:$0xff] }
  0xcb   : > { %v3210_v37 = vpack.c.bf16 %v2310_v36, %v2309_v35 }
  0xcc   : > { %3165 = vmatpush3.bf16.msra.mxu0 %v3164_v41  ;;  %1653 = vmatmul.mubr.f32.gmra.mrb[22].mxu1 %v3233_v55  ;;  %v3236_v41 = vld [vmem:[%s3884_s1 + $0x50] sm:$0xff] }
  0xcd   : > { %3189 = vmatpush3.bf16.msra.mxu1 %v3188_v42  ;;  %3167 = vmatprep.subr.bf16.mxu0 %v3166_v43  ;;  %v3212_v42 = vpack.c.bf16 %v2294_v39, %v2293_v38  ;;  %v3237_v43 = vld [vmem:[%s3884_s1 + $0x48] sm:$0xff] }
  0xce   : > { %3191 = vmatprep.subr.bf16.mxu1 %v3190_v47  ;;  %1797 = vmatprep.mubr.f32.mxu1 %v3234_v4  ;;  %v3241_v47 = vld [vmem:[%s3884_s1 + $0x60] sm:$0xff] }
  0xd0   : > { %3169 = vmatpush3.bf16.msra.mxu0 %v3168_v53 }
  0xd1   : > { %3193 = vmatpush3.bf16.msra.mxu1 %v3192_v56  ;;  %3171 = vmatprep.subr.bf16.mxu0 %v3170_v60 }
  0xd2   : > { %3195 = vmatprep.subr.bf16.mxu1 %v3194_v0 }
  0xd4   : > { %3173 = vmatpush3.bf16.msra.mxu0 %v3172_v7 }
  0xd5   : > { %3197 = vmatpush3.bf16.msra.mxu1 %v3196_v8  ;;  %3175 = vmatprep.subr.bf16.mxu0 %v3174_v11 }
  0xd6   : > { %3199 = vmatprep.subr.bf16.mxu1 %v3198_v12 }
  0xd8   : > { %3177 = vmatpush3.bf16.msra.mxu0 %v3176_v19 }
  0xd9   : > { %3201 = vmatpush3.bf16.msra.mxu1 %v3200_v20  ;;  %3179 = vmatprep.subr.bf16.mxu0 %v3178_v21 }
  0xda   : > { %3203 = vmatprep.subr.bf16.mxu1 %v3202_v24 }
  0xdc   : > { %3181 = vmatpush3.bf16.msra.mxu0 %v3180_v28 }
  0xdd   : > { %3205 = vmatpush3.bf16.msra.mxu1 %v3204_v29  ;;  %3215 = vmatprep.subr.bf16.mxu0 %v3214_v30 }
  0xde   : > { %3207 = vmatprep.subr.bf16.mxu1 %v3206_v31 }
  0xdf   : > { %1723 = vmatmul.mubr.f32.vlgmr.msra.gmra.mrb[22].mxu0 %v3235_v40 }
  0xe0   : > { %1727 = vmatprep.mubr.f32.mxu0 %v3236_v41  ;;  %3217 = vmatpush3.bf16.msra.mxu0 %v3214_v30 }
  0xe1   : > { %3209 = vmatpush3.bf16.msra.mxu1 %v3208_v2 }
  0xe2   : > { %3211 = vmatprep.subr.bf16.mxu1 %v3210_v37 }
  0xe3   : > { %1728 = vmatmul.mubr.f32.gmra.mrb[24].mxu0 %v3237_v43 }
  0xe4   : > { %2815 = vmatprep.mubr.msk.f32.mxu0 %vm375_vm0, %v3238_v44 }
  0xe5   : > { %3213 = vmatpush3.bf16.msra.mxu1 %v3212_v42 }
  0xe7   : > { %2816 = vmatmul.mubr.msk.f32.vlgmr.msra.gmra.mrb[26].mxu0 %vm375_vm0, %v3239_v45 }
  0xe8   : > { %1798 = vmatmul.mubr.f32.vlgmr.msra.gmra.mrb[24].mxu1 %v3240_v48 }
  0xe9   : > { %1802 = vmatprep.mubr.f32.mxu1 %v3241_v47 }
  0xec   : > { %1803 = vmatmul.mubr.f32.gmra.mrb[26].mxu1 %v3242_v49 }
 0x10a   : > { %v2350_v51 = vpop.f32.mrb[0].mxu0 }
 0x10b   : > { %v2388_v54 = vpop.f32.mrb[0].mxu1  ;;  %v2351_v50 = vpop.f32.mrb[1].mxu0 }
 0x10c   : > { %v2352_v58 = vadd.f32 %v2351_v50, %v2350_v51  ;;  %v2389_v52 = vpop.f32.mrb[1].mxu1 }
 0x10d   : > { %v2390_v53 = vadd.f32 %v2389_v52, %v2388_v54 }
 0x10e   : > { %v2353_v55 = vpop.f32.mrb[2].mxu0 }
 0x10f   : > { %v524_v56 = vadd.f32 %v2390_v53, %v2352_v58  ;;  %v2391_v60 = vpop.f32.mrb[2].mxu1  ;;  %v2354_v57 = vpop.f32.mrb[3].mxu0 }
 0x110   : > { %v2355_v59 = vadd.f32 %v2354_v57, %v2353_v55  ;;  %v2392_v62 = vpop.f32.mrb[3].mxu1 }
 0x111   : > { %v2393_v0 = vadd.f32 %v2392_v62, %v2391_v60 }
 0x113   : > { %v529_v61 = vadd.f32 %v2393_v0, %v2355_v59  ;;  %v2796_v63 = vpop.f32.mrb[4].mxu1 }
 0x114   : > { %v673_v3 = vpop.f32.mrb[5].mxu1 }
 0x12a   : > { %v2426_v4 = vpop.f32.mrb[4].mxu0 }
 0x12b   : > { %v2427_v5 = vpop.f32.mrb[5].mxu0 }
 0x12c   : > { %v2428_v6 = vadd.f32 %v2427_v5, %v2426_v4 }
 0x12e   : > { %v599_v7 = vadd.f32 %v2428_v6, %v524_v56  ;;  %v2429_v8 = vpop.f32.mrb[6].mxu0 }
 0x12f   : > { %v2430_v11 = vpop.f32.mrb[7].mxu0 }
 0x130   : > { %v2431_v9 = vadd.f32 %v2430_v11, %v2429_v8  ;;  %v674_v10 = vadd.f32 %v673_v3, %v599_v7 }
 0x132   : > { %v604_v13 = vadd.f32 %v2431_v9, %v529_v61 }
 0x133   : > { %v2468_v12 = vpop.f32.mrb[6].mxu1 }
 0x134   : > { %v679_v14 = vadd.f32 %v2796_v63, %v604_v13  ;;  %v2469_v15 = vpop.f32.mrb[7].mxu1 }
 0x135   : > { %v2470_v16 = vadd.f32 %v2469_v15, %v2468_v12 }
 0x137   : > { %v2471_v17 = vpop.f32.mrb[8].mxu1 }
 0x138   : > { %v2472_v18 = vpop.f32.mrb[9].mxu1 }
 0x139   : > { %v2473_v19 = vadd.f32 %v2472_v18, %v2471_v17 }
 0x14a   : > { %v2506_v20 = vpop.f32.mrb[8].mxu0 }
 0x14b   : > { %v2507_v21 = vpop.f32.mrb[9].mxu0 }
 0x14c   : > { %v2508_v22 = vadd.f32 %v2507_v21, %v2506_v20 }
 0x14e   : > { %v923_v23 = vadd.f32 %v2508_v22, %v2470_v16  ;;  %v2509_v32 = vpop.f32.mrb[10].mxu0 }
 0x14f   : > { %v2510_v24 = vpop.f32.mrb[11].mxu0 }
 0x150   : > { %v2511_v1 = vadd.f32 %v2510_v24, %v2509_v32 }
 0x152   : > { %v928_v25 = vadd.f32 %v2511_v1, %v2473_v19  ;;  %v2803_v34 = vpop.f32.mrb[12].mxu0 }
 0x153   : > { %v2544_v26 = vpop.f32.mrb[10].mxu1  ;;  %v1072_v27 = vpop.f32.mrb[13].mxu0 }
 0x154   : > { %v2545_v28 = vpop.f32.mrb[11].mxu1 }
 0x155   : > { %v2546_v29 = vadd.f32 %v2545_v28, %v2544_v26 }
 0x157   : > { %v2547_v30 = vpop.f32.mrb[12].mxu1  ;;  %v998_v31 = vadd.f32 %v2546_v29, %v923_v23 }
 0x158   : > { %v2548_v46 = vpop.f32.mrb[13].mxu1 }
 0x159   : > { %v1073_v33 = vadd.f32 %v1072_v27, %v998_v31  ;;  %v2549_v35 = vadd.f32 %v2548_v46, %v2547_v30  ;;  %v1890_v27 = vpop.permute.xlu0 %1889  ;;  %v1904_v46 = vld [vmem:[%s3886_s3] sm:$0xff] }
 0x15b   : > { %v1081_v36 = vmax.f32 %v674_v10, %v1073_v33  ;;  %v1003_v2 = vadd.f32 %v2549_v35, %v928_v25 }
 0x15d   : > { %v1078_v37 = vadd.f32 %v2803_v34, %v1003_v2 }
 0x15f   : > { %v1082_v38 = vmax.f32 %v679_v14, %v1078_v37 }
 0x172   : > { %v2586_v39 = vpop.f32.mrb[14].mxu0 }
 0x173   : > { %v2624_v40 = vpop.f32.mrb[14].mxu1  ;;  %v2587_v41 = vpop.f32.mrb[15].mxu0 }
 0x174   : > { %v2588_v42 = vadd.f32 %v2587_v41, %v2586_v39  ;;  %v2625_v43 = vpop.f32.mrb[15].mxu1 }
 0x175   : > { %v2626_v44 = vadd.f32 %v2625_v43, %v2624_v40 }
 0x176   : > { %v2589_v45 = vpop.f32.mrb[16].mxu0 }
 0x177   : > { %v1324_v48 = vadd.f32 %v2626_v44, %v2588_v42  ;;  %v2627_v47 = vpop.f32.mrb[16].mxu1  ;;  %v2590_v49 = vpop.f32.mrb[17].mxu0 }
 0x178   : > { %v2591_v51 = vadd.f32 %v2590_v49, %v2589_v45  ;;  %v2628_v54 = vpop.f32.mrb[17].mxu1 }
 0x179   : > { %v2629_v50 = vadd.f32 %v2628_v54, %v2627_v47 }
 0x17b   : > { %v1329_v58 = vadd.f32 %v2629_v50, %v2591_v51  ;;  %v2810_v52 = vpop.f32.mrb[18].mxu1  ;;  %v1921_v50 = vld [vmem:[#allocation2] sm:$0x1] }
 0x17c   : > { %v1473_v53 = vpop.f32.mrb[19].mxu1 }
 0x192   : > { %v2662_v55 = vpop.f32.mrb[18].mxu0 }
 0x193   : > { %v2663_v56 = vpop.f32.mrb[19].mxu0 }
 0x194   : > { %v2664_v60 = vadd.f32 %v2663_v56, %v2662_v55 }
 0x196   : > { %v1399_v57 = vadd.f32 %v2664_v60, %v1324_v48  ;;  %v2665_v59 = vpop.f32.mrb[20].mxu0 }
 0x197   : > { %v2666_v62 = vpop.f32.mrb[21].mxu0 }
 0x198   : > { %v1474_v0 = vadd.f32 %v1473_v53, %v1399_v57  ;;  %v2667_v61 = vadd.f32 %v2666_v62, %v2665_v59 }
 0x19a   : > { %v1404_v63 = vadd.f32 %v2667_v61, %v1329_v58  ;;  %v1482_v3 = vmax.f32 %v1081_v36, %v1474_v0  ;;  %v1895_v36 = vpop.permute.xlu0 %1894 }
 0x19b   : > { %v2704_v4 = vpop.f32.mrb[20].mxu1 }
 0x19c   : > { %v1479_v5 = vadd.f32 %v2810_v52, %v1404_v63  ;;  %v2705_v6 = vpop.f32.mrb[21].mxu1 }
 0x19d   : > { %v2706_v7 = vadd.f32 %v2705_v6, %v2704_v4 }
 0x19e   : > { %v1483_v8 = vmax.f32 %v1082_v38, %v1479_v5  ;;  %v1905_v38 = vld [vmem:[%s3886_s3 + $0x8] sm:$0xff] }
 0x19f   : > { %v2707_v11 = vpop.f32.mrb[22].mxu1 }
 0x1a0   : > { %v2708_v9 = vpop.f32.mrb[23].mxu1 }
 0x1a1   : > { %v2709_v10 = vadd.f32 %v2708_v9, %v2707_v11 }
 0x1b2   : > { %v2742_v13 = vpop.f32.mrb[22].mxu0 }
 0x1b3   : > { %v2743_v12 = vpop.f32.mrb[23].mxu0 }
 0x1b4   : > { %v2744_v14 = vadd.f32 %v2743_v12, %v2742_v13 }
 0x1b6   : > { %v1725_v15 = vadd.f32 %v2744_v14, %v2706_v7  ;;  %v2745_v16 = vpop.f32.mrb[24].mxu0 }
 0x1b7   : > { %v2746_v17 = vpop.f32.mrb[25].mxu0 }
 0x1b8   : > { %v2747_v18 = vadd.f32 %v2746_v17, %v2745_v16 }
 0x1ba   : > { %v1730_v19 = vadd.f32 %v2747_v18, %v2709_v10  ;;  %v2817_v20 = vpop.f32.mrb[26].mxu0 }
 0x1bb   : > { %v2780_v21 = vpop.f32.mrb[24].mxu1  ;;  %v1874_v22 = vpop.f32.mrb[27].mxu0 }
 0x1bc   : > { %v2781_v23 = vpop.f32.mrb[25].mxu1 }
 0x1bd   : > { %v2782_v32 = vadd.f32 %v2781_v23, %v2780_v21 }
 0x1bf   : > { %v2783_v24 = vpop.f32.mrb[26].mxu1  ;;  %v1800_v1 = vadd.f32 %v2782_v32, %v1725_v15 }
 0x1c0   : > { %v2784_v25 = vpop.f32.mrb[27].mxu1 }
 0x1c1   : > { %v2785_v34 = vadd.f32 %v2784_v25, %v2783_v24  ;;  %v1875_v26 = vadd.f32 %v1874_v22, %v1800_v1 }
 0x1c3   : > { %v1805_v28 = vadd.f32 %v2785_v34, %v1730_v19  ;;  %v1883_v29 = vmax.f32 %v1482_v3, %v1875_v26 }
 0x1c5   : > { %v1897_v30 = vadd.f32 %v1890_v27, %v1883_v29  ;;  %v1880_v31 = vadd.f32 %v2817_v20, %v1805_v28 }
 0x1c7   : > { %v1899_v33 = vmax.f32 %v1897_v30, 0.0  ;;  %v1884_v35 = vmax.f32 %v1483_v8, %v1880_v31 }
 0x1c9   : > { %v1898_v2 = vadd.f32 %v1895_v36, %v1884_v35  ;;  %v1906_v37 = vmul.f32 %v1904_v46, %v1899_v33  ;;  %1902 = vst.msk [vmem:[%s259_s22] sm:$0xff] %vm1901_vm1, %v1899_v33 }
 0x1cb   : > { %v1900_v39 = vmax.f32 %v1898_v2, 0.0  ;;  %v1908_v40 = vsel %vm1901_vm1, %v1906_v37, 0.0 }
 0x1cc   : > { %1909 = vadd.xlane.f32.xlu1 %v1908_v40 }
 0x1cd   : > { %1903 = vst.msk [vmem:[%s259_s22 + $0x8] sm:$0xff] %vm1901_vm1, %v1900_v39  ;;  %v1907_v41 = vmul.f32 %v1905_v38, %v1900_v39 }
 0x1cf   : > { %v1911_v42 = vsel %vm1901_vm1, %v1907_v41, 0.0 }
 0x1d0   : > { %1912 = vadd.xlane.f32.xlu1 %v1911_v42 }
 0x259   : > { %v1910_v43 = vpop.xlane.xlu1 %1909 }
 0x25d   : > { %v1913_v44 = vpop.xlane.xlu1 %1912 }
 0x25e   : > { %v1914_v45 = vadd.f32 %v1913_v44, %v1910_v43 }
 0x260   : > { %v1915_v48 = vrot.slane %v1914_v45, 4 }
 0x262   : > { %v1916_v47 = vadd.f32 %v1915_v48, %v1914_v45 }
 0x264   : > { %v1917_v49 = vrot.slane %v1916_v47, 2 }
 0x266   : > { %v1918_v51 = vadd.f32 %v1917_v49, %v1916_v47 }
 0x268   : > { %v1919_v54 = vrot.slane %v1918_v51, 1 }
 0x26a   : > { %v1920_v58 = vadd.f32 %v1919_v54, %v1918_v51 }
 0x26c   : > { %v1922_v52 = vadd.f32 %v1921_v50, %v1920_v58 }
 0x26e   : > { %1924 = vst.msk [vmem:[%s262_s30] sm:$0x1] %vm1923_vm2, %v1922_v52 }
 0x26f PF: > { %s19_s23 = sadd.s32 1, %s3249_s23  }
 0x270   : > { %p16_p4 = scmp.ge.s32.totalorder %s19_s23, 4  }
 0x272   :  { %18 = sbr.rel (!%p16_p4) target bundleno = 3 (0x3), region = 85 }

</bundles_post_ra>
